<compile_context>
chip_gen: v7x
topology: tpu7x:2x2x1
jax: 0.10.0
libtpu: 0.0.40
codegen_flags: <defaults>
</compile_context>

<pallas_src>
import functools

import jax
import jax.numpy as jnp
from jax.experimental import pallas as pl
from jax.experimental.pallas import tpu as pltpu


# ----------------------------------------------------------------------------
# Encoder: single pallas_call. Hoisted X@Wih for all timesteps, then a small
# unrolled recurrence carrying (h, c) in values; only h@Whh is sequential.
# ----------------------------------------------------------------------------
def _encoder_kernel(x_ref, wih_ref, whh_ref, b_ref, h_out_ref, c_out_ref,
                    xg_scr):
    B, H = h_out_ref.shape
    SB, _ = x_ref.shape
    S = SB // B

    # One big input projection for every timestep (bias folded in here so the
    # broadcast is hoisted out of the recurrence).
    xg_scr[...] = (jnp.dot(x_ref[...], wih_ref[...],
                           preferred_element_type=jnp.float32)
                   + b_ref[...])                     # (S*B, 4H)

    whh = whh_ref[...]                               # (H, 4H), resident
    h = jnp.zeros((B, H), jnp.float32)
    c = jnp.zeros((B, H), jnp.float32)

    # S is small and static -> fully unrolled; slices below are static and
    # 8-sublane / 128-lane aligned.
    for s in range(S):
        gates = (xg_scr[s * B:(s + 1) * B, :]
                 + jnp.dot(h, whh, preferred_element_type=jnp.float32))
        i = jax.nn.sigmoid(gates[:, 0 * H:1 * H])
        f = jax.nn.sigmoid(gates[:, 1 * H:2 * H])
        g = jnp.tanh(gates[:, 2 * H:3 * H])
        o = jax.nn.sigmoid(gates[:, 3 * H:4 * H])
        c = f * c + i * g
        h = o * jnp.tanh(c)

    h_out_ref[...] = h
    c_out_ref[...] = c


def run_encoder(x_flat, wih, whh, b, batch):
    """x_flat: (S*B, E) time-major flattened embedded source -> (h, c) (B, H)."""
    H = whh.shape[0]
    return pl.pallas_call(
        _encoder_kernel,
        out_shape=(jax.ShapeDtypeStruct((batch, H), jnp.float32),
                   jax.ShapeDtypeStruct((batch, H), jnp.float32)),
        scratch_shapes=[pltpu.VMEM((x_flat.shape[0], 4 * H), jnp.float32)],
    )(x_flat, wih, whh, b)


# ----------------------------------------------------------------------------
# Decoder: the whole greedy / teacher-forced decode loop in ONE pallas_call.
# Grid axis = decode step ("arbitrary"). Carries (h, c, x_emb) in VMEM scratch.
# Teacher-forcing flags are scalar-prefetched into SMEM; the per-step teacher
# token embedding arrives as a (1, B, E) block; the greedy path does argmax +
# one-hot @ dec_emb in-kernel with dec_emb resident in VMEM.
# ----------------------------------------------------------------------------
def _decoder_kernel(tf_ref, tgt_ref, h0_ref, c0_ref, w_ref, b_ref,
                    wout_ref, bout_ref, emb_ref,
                    out_ref,
                    h_scr, c_scr, x_scr):
    t = pl.program_id(0)
    B, H = h_scr.shape
    V = wout_ref.shape[1]

    @pl.when(t == 0)
    def _():
        h_scr[...] = h0_ref[...]
        c_scr[...] = c0_ref[...]

    # Decoder input for this step: the teacher token embedding at t == 0 or
    # when this step's (whole-batch) coin came up heads; otherwise keep the
    # greedy-argmax embedding left in x_scr by the previous step.
    @pl.when(jnp.logical_or(t == 0, tf_ref[t] != 0))
    def _():
        x_scr[...] = tgt_ref[0]

    # Fused gate matmul: [x, h] @ [Wih; Whh] + b   (PyTorch gate order i,f,g,o)
    xh = jnp.concatenate([x_scr[...], h_scr[...]], axis=1)        # (B, E+H)
    gates = (jnp.dot(xh, w_ref[...], preferred_element_type=jnp.float32)
             + b_ref[...])                                        # (B, 4H)
    i = jax.nn.sigmoid(gates[:, 0 * H:1 * H])
    f = jax.nn.sigmoid(gates[:, 1 * H:2 * H])
    g = jnp.tanh(gates[:, 2 * H:3 * H])
    o = jax.nn.sigmoid(gates[:, 3 * H:4 * H])
    c_new = f * c_scr[...] + i * g
    h_new = o * jnp.tanh(c_new)
    h_scr[...] = h_new
    c_scr[...] = c_new

    # Output projection (logits for this decode step).
    logits = (jnp.dot(h_new, wout_ref[...], preferred_element_type=jnp.float32)
              + bout_ref[...])                                    # (B, V)
    out_ref[0] = logits

    # In-kernel greedy decode: first-match argmax (matches torch.argmax) and
    # its embedding via one-hot @ dec_emb (dec_emb stays resident in VMEM).
    col = jax.lax.broadcasted_iota(jnp.int32, (B, V), 1)
    row_max = jnp.max(logits, axis=1, keepdims=True)
    first_best = jnp.min(jnp.where(logits == row_max, col, V),
                         axis=1, keepdims=True)                   # (B, 1)
    one_hot = (col == first_best).astype(jnp.float32)             # (B, V)
    x_scr[...] = jnp.dot(one_hot, emb_ref[...],
                         preferred_element_type=jnp.float32)      # (B, E)


def run_decoder(tf_flags, tgt_emb, h0, c0, w_xh, b, wout, bout, dec_emb):
    T, B, E = tgt_emb.shape
    H = h0.shape[1]
    V = wout.shape[1]
    return pl.pallas_call(
        _decoder_kernel,
        out_shape=jax.ShapeDtypeStruct((T - 1, B, V), jnp.float32),
        grid_spec=pltpu.PrefetchScalarGridSpec(
            num_scalar_prefetch=1,
            grid=(T - 1,),
            in_specs=[
                pl.BlockSpec((1, B, E), lambda t, tf: (t, 0, 0)),    # teacher emb row t
                pl.BlockSpec((B, H), lambda t, tf: (0, 0)),          # h0 (encoder)
                pl.BlockSpec((B, H), lambda t, tf: (0, 0)),          # c0 (encoder)
                pl.BlockSpec((E + H, 4 * H), lambda t, tf: (0, 0)),  # [Wih; Whh]
                pl.BlockSpec((1, 4 * H), lambda t, tf: (0, 0)),      # gate bias
                pl.BlockSpec((H, V), lambda t, tf: (0, 0)),          # Wout
                pl.BlockSpec((1, V), lambda t, tf: (0, 0)),          # bout
                pl.BlockSpec((V, E), lambda t, tf: (0, 0)),          # dec_emb (resident)
            ],
            out_specs=pl.BlockSpec((1, B, V), lambda t, tf: (t, 0, 0)),
            scratch_shapes=[pltpu.VMEM((B, H), jnp.float32),   # h carry
                            pltpu.VMEM((B, H), jnp.float32),   # c carry
                            pltpu.VMEM((B, E), jnp.float32)],  # next-input emb
        ),
        compiler_params=pltpu.CompilerParams(
            dimension_semantics=("arbitrary",)),
    )(tf_flags, tgt_emb, h0, c0, w_xh, b, wout, bout, dec_emb)


# ----------------------------------------------------------------------------
# Seq2Seq forward (mirrors the PyTorch module's forward semantics)
# ----------------------------------------------------------------------------
def seq2seq_forward(params, source, target, tf_key, teacher_force_ratio=0.5):
    B, src_len = source.shape
    _, tgt_len = target.shape
    E = params["enc_emb"].shape[1]
    V = params["dec_wout"].shape[1]

    # --- encoder: embed source (glue gather), time-major flatten, Pallas LSTM
    src_emb = jnp.take(params["enc_emb"], source, axis=0)           # (B, S, E)
    src_emb = jnp.transpose(src_emb, (1, 0, 2))                     # (S, B, E)
    x_flat = src_emb.reshape(src_len * B, E).astype(jnp.float32)
    h, c = run_encoder(x_flat, params["enc_wih"], params["enc_whh"],
                       params["enc_b"], batch=B)

    # --- decoder: fully fused decode loop in one kernel
    target_tm = target.T                                            # (T, B)
    tgt_emb = jnp.take(params["dec_emb"], target_tm,
                       axis=0).astype(jnp.float32)                  # (T, B, E)
    # one whole-batch coin per decode step (same semantics as random.random())
    tf_flags = (jax.random.uniform(tf_key, (tgt_len,))
                < teacher_force_ratio).astype(jnp.int32)
    w_xh = jnp.concatenate([params["dec_wih"], params["dec_whh"]], axis=0)

    dec_out = run_decoder(tf_flags, tgt_emb, h, c, w_xh, params["dec_b"],
                          params["dec_wout"], params["dec_bout"],
                          params["dec_emb"].astype(jnp.float32))    # (T-1, B, V)

    # outputs[0] stays zero, as in the PyTorch reference
    return jnp.concatenate([jnp.zeros((1, B, V), jnp.float32), dec_out],
                           axis=0)                                  # (T, B, V)


# ----------------------------------------------------------------------------
# Deterministic parameter initialization (synthetic; no checkpoint loading)
# ----------------------------------------------------------------------------
def init_params(key, src_vocab, tgt_vocab, embed, hidden):
    ks = jax.random.split(key, 9)
    s = 0.1
    return {
        # encoder  (single bias = b_ih + b_hh folded)
        "enc_emb": s * jax.random.normal(ks[0], (src_vocab, embed), jnp.float32),
        "enc_wih": s * jax.random.normal(ks[1], (embed, 4 * hidden), jnp.float32),
        "enc_whh": s * jax.random.normal(ks[2], (hidden, 4 * hidden), jnp.float32),
        "enc_b":   s * jax.random.normal(ks[3], (1, 4 * hidden), jnp.float32),
        # decoder
        "dec_emb": s * jax.random.normal(ks[4], (tgt_vocab, embed), jnp.float32),
        "dec_wih": s * jax.random.normal(ks[5], (embed, 4 * hidden), jnp.float32),
        "dec_whh": s * jax.random.normal(ks[6], (hidden, 4 * hidden), jnp.float32),
        "dec_b":   s * jax.random.normal(ks[7], (1, 4 * hidden), jnp.float32),
        "dec_wout": s * jax.random.normal(ks[8], (hidden, tgt_vocab), jnp.float32),
        "dec_bout": jnp.zeros((1, tgt_vocab), jnp.float32),
    }


if __name__ == "__main__":
    key = jax.random.PRNGKey(0)
    k_param, k_src, k_tgt, k_tf = jax.random.split(key, 4)

    # small but lane-friendly shapes (last dims multiples of 128)
    B, S, T = 8, 8, 8            # batch, source len, target len
    E, H = 128, 128              # embedding dim, hidden dim
    SRC_V, TGT_V = 256, 256      # vocab sizes (TGT_V = decoder.output_size)

    params = init_params(k_param, SRC_V, TGT_V, E, H)
    source = jax.random.randint(k_src, (B, S), 0, SRC_V, dtype=jnp.int32)
    target = jax.random.randint(k_tgt, (B, T), 0, TGT_V, dtype=jnp.int32)

    forward = jax.jit(functools.partial(seq2seq_forward,
                                        teacher_force_ratio=0.5))
    outputs = forward(params, source, target, k_tf)
    outputs = jax.block_until_ready(outputs)
    assert outputs.shape == (T, B, TGT_V)
    assert bool(jnp.all(jnp.isfinite(outputs)))
    print("KERNEL_OK")
</pallas_src>

<mosaic_0001>
module attributes {stable_mosaic.version = 11 : i64} {
  func.func @_decoder_kernel(%arg0: i32, %arg1: memref<8xi32, #tpu.memory_space<smem>>, %arg2: memref<1x8x128xf32, #tpu.memory_space<vmem>>, %arg3: memref<8x128xf32, #tpu.memory_space<vmem>>, %arg4: memref<8x128xf32, #tpu.memory_space<vmem>>, %arg5: memref<256x512xf32, #tpu.memory_space<vmem>>, %arg6: memref<1x512xf32, #tpu.memory_space<vmem>>, %arg7: memref<128x256xf32, #tpu.memory_space<vmem>>, %arg8: memref<1x256xf32, #tpu.memory_space<vmem>>, %arg9: memref<256x128xf32, #tpu.memory_space<vmem>>, %arg10: memref<1x8x256xf32, #tpu.memory_space<vmem>>, %arg11: memref<8x128xf32, #tpu.memory_space<vmem>>, %arg12: memref<8x128xf32, #tpu.memory_space<vmem>>, %arg13: memref<8x128xf32, #tpu.memory_space<vmem>>) attributes {dimension_semantics = [#tpu.dimension_semantics<arbitrary>], iteration_bounds = array<i64: 7>, scalar_prefetch = 1 : i64, scratch_operands = 3 : i64, tpu.core_type = #tpu.core_type<tc>, window_params = [{transform_indices = @transform_0, window_bounds = array<i64: 1, 8, 128>}, {pipeline_mode = #tpu.pipeline_mode<synchronous>, transform_indices = @transform_1, window_bounds = array<i64: 8, 128>}, {pipeline_mode = #tpu.pipeline_mode<synchronous>, transform_indices = @transform_2, window_bounds = array<i64: 8, 128>}, {pipeline_mode = #tpu.pipeline_mode<synchronous>, transform_indices = @transform_3, window_bounds = array<i64: 256, 512>}, {pipeline_mode = #tpu.pipeline_mode<synchronous>, transform_indices = @transform_4, window_bounds = array<i64: 1, 512>}, {pipeline_mode = #tpu.pipeline_mode<synchronous>, transform_indices = @transform_5, window_bounds = array<i64: 128, 256>}, {pipeline_mode = #tpu.pipeline_mode<synchronous>, transform_indices = @transform_6, window_bounds = array<i64: 1, 256>}, {pipeline_mode = #tpu.pipeline_mode<synchronous>, transform_indices = @transform_7, window_bounds = array<i64: 256, 128>}, {transform_indices = @transform_8, window_bounds = array<i64: 1, 8, 256>}]} {
    %c0_i32 = arith.constant 0 : i32
    %0 = arith.cmpi eq, %arg0, %c0_i32 : i32
    %1 = arith.extui %0 : i1 to i32
    %c0_i32_0 = arith.constant 0 : i32
    %2 = arith.cmpi ne, %1, %c0_i32_0 : i32
    scf.if %2 {
      %c0_35 = arith.constant 0 : index
      %c0_36 = arith.constant 0 : index
      %70 = vector.load %arg3[%c0_35, %c0_36] : memref<8x128xf32, #tpu.memory_space<vmem>>, vector<8x128xf32>
      %c0_37 = arith.constant 0 : index
      %c0_38 = arith.constant 0 : index
      %71 = vector.load %arg11[%c0_37, %c0_38] : memref<8x128xf32, #tpu.memory_space<vmem>>, vector<8x128xf32>
      tpu.vector_store %arg11[%c0_37, %c0_38], %70 {strides = array<i32>} : memref<8x128xf32, #tpu.memory_space<vmem>>, vector<8x128xf32>,
      %c0_39 = arith.constant 0 : index
      %c0_40 = arith.constant 0 : index
      %72 = vector.load %arg4[%c0_39, %c0_40] : memref<8x128xf32, #tpu.memory_space<vmem>>, vector<8x128xf32>
      %c0_41 = arith.constant 0 : index
      %c0_42 = arith.constant 0 : index
      %73 = vector.load %arg12[%c0_41, %c0_42] : memref<8x128xf32, #tpu.memory_space<vmem>>, vector<8x128xf32>
      tpu.vector_store %arg12[%c0_41, %c0_42], %72 {strides = array<i32>} : memref<8x128xf32, #tpu.memory_space<vmem>>, vector<8x128xf32>,
    } else {
    }
    %c0_i32_1 = arith.constant 0 : i32
    %3 = arith.cmpi eq, %arg0, %c0_i32_1 : i32
    %4 = arith.index_cast %arg0 : i32 to index
    %5 = memref.load %arg1[%4] : memref<8xi32, #tpu.memory_space<smem>>
    %c0_i32_2 = arith.constant 0 : i32
    %6 = arith.cmpi ne, %5, %c0_i32_2 : i32
    %7 = arith.ori %3, %6 : i1
    %8 = arith.extui %7 : i1 to i32
    %c0_i32_3 = arith.constant 0 : i32
    %9 = arith.cmpi ne, %8, %c0_i32_3 : i32
    scf.if %9 {
      %c0_35 = arith.constant 0 : index
      %c0_36 = arith.constant 0 : index
      %c0_37 = arith.constant 0 : index
      %70 = vector.load %arg2[%c0_35, %c0_36, %c0_37] : memref<1x8x128xf32, #tpu.memory_space<vmem>>, vector<1x8x128xf32>
      %71 = vector.shape_cast %70 : vector<1x8x128xf32> to vector<8x128xf32>
      %c0_38 = arith.constant 0 : index
      %c0_39 = arith.constant 0 : index
      %72 = vector.load %arg13[%c0_38, %c0_39] : memref<8x128xf32, #tpu.memory_space<vmem>>, vector<8x128xf32>
      tpu.vector_store %arg13[%c0_38, %c0_39], %71 {strides = array<i32>} : memref<8x128xf32, #tpu.memory_space<vmem>>, vector<8x128xf32>,
    } else {
    }
    %c0 = arith.constant 0 : index
    %c0_4 = arith.constant 0 : index
    %10 = vector.load %arg13[%c0, %c0_4] : memref<8x128xf32, #tpu.memory_space<vmem>>, vector<8x128xf32>
    %c0_5 = arith.constant 0 : index
    %c0_6 = arith.constant 0 : index
    %11 = vector.load %arg11[%c0_5, %c0_6] : memref<8x128xf32, #tpu.memory_space<vmem>>, vector<8x128xf32>
    %12 = tpu.concatenate %10, %11 in 1 : vector<8x128xf32>, vector<8x128xf32> -> vector<8x256xf32>
    %c0_7 = arith.constant 0 : index
    %c0_8 = arith.constant 0 : index
    %13 = vector.load %arg5[%c0_7, %c0_8] : memref<256x512xf32, #tpu.memory_space<vmem>>, vector<256x512xf32>
    %cst = arith.constant dense<0.000000e+00> : vector<8x512xf32>
    %14 = tpu.matmul %12, %13, %cst {dimension_numbers = #tpu.dot_dimension_numbers<[1], [0], [0], [1], [0, 0, 1, 1], [], []>} : vector<8x256xf32>, vector<256x512xf32>, vector<8x512xf32> -> vector<8x512xf32>
    %c0_9 = arith.constant 0 : index
    %c0_10 = arith.constant 0 : index
    %15 = vector.load %arg6[%c0_9, %c0_10] : memref<1x512xf32, #tpu.memory_space<vmem>>, vector<1x512xf32>
    %16 = vector.broadcast %15 : vector<1x512xf32> to vector<8x512xf32>
    %17 = arith.addf %14, %16 : vector<8x512xf32>
    %18 = vector.extract_strided_slice %17 {offsets = [0, 0], sizes = [8, 128], strides = [1, 1]} : vector<8x512xf32> to vector<8x128xf32>
    %19 = arith.negf %18 : vector<8x128xf32>
    %20 = math.exp %19 : vector<8x128xf32>
    %cst_11 = arith.constant 1.000000e+00 : f32
    %21 = vector.broadcast %cst_11 : f32 to vector<8x128xf32>
    %22 = arith.addf %21, %20 : vector<8x128xf32>
    %23 = arith.divf %21, %22 : vector<8x128xf32>
    %24 = vector.extract_strided_slice %17 {offsets = [0, 128], sizes = [8, 128], strides = [1, 1]} : vector<8x512xf32> to vector<8x128xf32>
    %25 = arith.negf %24 : vector<8x128xf32>
    %26 = math.exp %25 : vector<8x128xf32>
    %cst_12 = arith.constant 1.000000e+00 : f32
    %27 = vector.broadcast %cst_12 : f32 to vector<8x128xf32>
    %28 = arith.addf %27, %26 : vector<8x128xf32>
    %29 = arith.divf %27, %28 : vector<8x128xf32>
    %30 = vector.extract_strided_slice %17 {offsets = [0, 256], sizes = [8, 128], strides = [1, 1]} : vector<8x512xf32> to vector<8x128xf32>
    %31 = math.tanh %30 : vector<8x128xf32>
    %32 = vector.extract_strided_slice %17 {offsets = [0, 384], sizes = [8, 128], strides = [1, 1]} : vector<8x512xf32> to vector<8x128xf32>
    %33 = arith.negf %32 : vector<8x128xf32>
    %34 = math.exp %33 : vector<8x128xf32>
    %cst_13 = arith.constant 1.000000e+00 : f32
    %35 = vector.broadcast %cst_13 : f32 to vector<8x128xf32>
    %36 = arith.addf %35, %34 : vector<8x128xf32>
    %37 = arith.divf %35, %36 : vector<8x128xf32>
    %c0_14 = arith.constant 0 : index
    %c0_15 = arith.constant 0 : index
    %38 = vector.load %arg12[%c0_14, %c0_15] : memref<8x128xf32, #tpu.memory_space<vmem>>, vector<8x128xf32>
    %39 = arith.mulf %29, %38 : vector<8x128xf32>
    %40 = arith.mulf %23, %31 : vector<8x128xf32>
    %41 = arith.addf %39, %40 : vector<8x128xf32>
    %42 = math.tanh %41 : vector<8x128xf32>
    %43 = arith.mulf %37, %42 : vector<8x128xf32>
    %c0_16 = arith.constant 0 : index
    %c0_17 = arith.constant 0 : index
    %44 = vector.load %arg11[%c0_16, %c0_17] : memref<8x128xf32, #tpu.memory_space<vmem>>, vector<8x128xf32>
    tpu.vector_store %arg11[%c0_16, %c0_17], %43 {strides = array<i32>} : memref<8x128xf32, #tpu.memory_space<vmem>>, vector<8x128xf32>,
    %c0_18 = arith.constant 0 : index
    %c0_19 = arith.constant 0 : index
    %45 = vector.load %arg12[%c0_18, %c0_19] : memref<8x128xf32, #tpu.memory_space<vmem>>, vector<8x128xf32>
    tpu.vector_store %arg12[%c0_18, %c0_19], %41 {strides = array<i32>} : memref<8x128xf32, #tpu.memory_space<vmem>>, vector<8x128xf32>,
    %c0_20 = arith.constant 0 : index
    %c0_21 = arith.constant 0 : index
    %46 = vector.load %arg7[%c0_20, %c0_21] : memref<128x256xf32, #tpu.memory_space<vmem>>, vector<128x256xf32>
    %cst_22 = arith.constant dense<0.000000e+00> : vector<8x256xf32>
    %47 = tpu.matmul %43, %46, %cst_22 {dimension_numbers = #tpu.dot_dimension_numbers<[1], [0], [0], [1], [0, 0, 1, 1], [], []>} : vector<8x128xf32>, vector<128x256xf32>, vector<8x256xf32> -> vector<8x256xf32>
    %c0_23 = arith.constant 0 : index
    %c0_24 = arith.constant 0 : index
    %48 = vector.load %arg8[%c0_23, %c0_24] : memref<1x256xf32, #tpu.memory_space<vmem>>, vector<1x256xf32>
    %49 = vector.broadcast %48 : vector<1x256xf32> to vector<8x256xf32>
    %50 = arith.addf %47, %49 : vector<8x256xf32>
    %c0_25 = arith.constant 0 : index
    %c0_26 = arith.constant 0 : index
    %c0_27 = arith.constant 0 : index
    %51 = vector.load %arg10[%c0_25, %c0_26, %c0_27] : memref<1x8x256xf32, #tpu.memory_space<vmem>>, vector<1x8x256xf32>
    %52 = vector.shape_cast %51 : vector<1x8x256xf32> to vector<8x256xf32>
    %53 = vector.shape_cast %50 : vector<8x256xf32> to vector<1x8x256xf32>
    tpu.vector_store %arg10[%c0_25, %c0_26, %c0_27], %53 {strides = array<i32>} : memref<1x8x256xf32, #tpu.memory_space<vmem>>, vector<1x8x256xf32>,
    %54 = tpu.iota {dimensions = array<i32: 1>} : vector<8x256xi32>
    %cst_28 = arith.constant dense<0xFF800000> : vector<8xf32>
    %55 = vector.multi_reduction <maximumf>, %50, %cst_28 [1] : vector<8x256xf32> to vector<8xf32>
    %56 = vector.shape_cast %55 : vector<8xf32> to vector<8x1xf32>
    %57 = vector.broadcast %56 : vector<8x1xf32> to vector<8x256xf32>
    %58 = arith.cmpf oeq, %50, %57 : vector<8x256xf32>
    %c256_i32 = arith.constant 256 : i32
    %59 = vector.broadcast %c256_i32 : i32 to vector<8x256xi32>
    %60 = arith.select %58, %54, %59 : vector<8x256xi1>, vector<8x256xi32>
    %cst_29 = arith.constant dense<2147483647> : vector<8xi32>
    %61 = vector.multi_reduction <minsi>, %60, %cst_29 [1] : vector<8x256xi32> to vector<8xi32>
    %62 = vector.shape_cast %61 : vector<8xi32> to vector<8x1xi32>
    %63 = vector.broadcast %62 : vector<8x1xi32> to vector<8x256xi32>
    %64 = arith.cmpi eq, %54, %63 : vector<8x256xi32>
    %65 = arith.extui %64 : vector<8x256xi1> to vector<8x256xi32>
    %66 = arith.sitofp %65 : vector<8x256xi32> to vector<8x256xf32>
    %c0_30 = arith.constant 0 : index
    %c0_31 = arith.constant 0 : index
    %67 = vector.load %arg9[%c0_30, %c0_31] : memref<256x128xf32, #tpu.memory_space<vmem>>, vector<256x128xf32>
    %cst_32 = arith.constant dense<0.000000e+00> : vector<8x128xf32>
    %68 = tpu.matmul %66, %67, %cst_32 {dimension_numbers = #tpu.dot_dimension_numbers<[1], [0], [0], [1], [0, 0, 1, 1], [], []>} : vector<8x256xf32>, vector<256x128xf32>, vector<8x128xf32> -> vector<8x128xf32>
    %c0_33 = arith.constant 0 : index
    %c0_34 = arith.constant 0 : index
    %69 = vector.load %arg13[%c0_33, %c0_34] : memref<8x128xf32, #tpu.memory_space<vmem>>, vector<8x128xf32>
    tpu.vector_store %arg13[%c0_33, %c0_34], %68 {strides = array<i32>} : memref<8x128xf32, #tpu.memory_space<vmem>>, vector<8x128xf32>,
    return
  }
  func.func @transform_0(%arg0: i32, %arg1: memref<8xi32, #tpu.memory_space<smem>>) -> (i32, i32, i32) {
    %c0_i32 = arith.constant 0 : i32
    %c0_i32_0 = arith.constant 0 : i32
    %c0_i32_1 = arith.constant 0 : i32
    return %arg0, %c0_i32, %c0_i32_0 : i32, i32, i32
  }
  func.func @transform_1(%arg0: i32, %arg1: memref<8xi32, #tpu.memory_space<smem>>) -> (i32, i32) {
    %c0_i32 = arith.constant 0 : i32
    %c0_i32_0 = arith.constant 0 : i32
    %c0_i32_1 = arith.constant 0 : i32
    return %c0_i32, %c0_i32_0 : i32, i32
  }
  func.func @transform_2(%arg0: i32, %arg1: memref<8xi32, #tpu.memory_space<smem>>) -> (i32, i32) {
    %c0_i32 = arith.constant 0 : i32
    %c0_i32_0 = arith.constant 0 : i32
    %c0_i32_1 = arith.constant 0 : i32
    return %c0_i32, %c0_i32_0 : i32, i32
  }
  func.func @transform_3(%arg0: i32, %arg1: memref<8xi32, #tpu.memory_space<smem>>) -> (i32, i32) {
    %c0_i32 = arith.constant 0 : i32
    %c0_i32_0 = arith.constant 0 : i32
    %c0_i32_1 = arith.constant 0 : i32
    return %c0_i32, %c0_i32_0 : i32, i32
  }
  func.func @transform_4(%arg0: i32, %arg1: memref<8xi32, #tpu.memory_space<smem>>) -> (i32, i32) {
    %c0_i32 = arith.constant 0 : i32
    %c0_i32_0 = arith.constant 0 : i32
    %c0_i32_1 = arith.constant 0 : i32
    return %c0_i32, %c0_i32_0 : i32, i32
  }
  func.func @transform_5(%arg0: i32, %arg1: memref<8xi32, #tpu.memory_space<smem>>) -> (i32, i32) {
    %c0_i32 = arith.constant 0 : i32
    %c0_i32_0 = arith.constant 0 : i32
    %c0_i32_1 = arith.constant 0 : i32
    return %c0_i32, %c0_i32_0 : i32, i32
  }
  func.func @transform_6(%arg0: i32, %arg1: memref<8xi32, #tpu.memory_space<smem>>) -> (i32, i32) {
    %c0_i32 = arith.constant 0 : i32
    %c0_i32_0 = arith.constant 0 : i32
    %c0_i32_1 = arith.constant 0 : i32
    return %c0_i32, %c0_i32_0 : i32, i32
  }
  func.func @transform_7(%arg0: i32, %arg1: memref<8xi32, #tpu.memory_space<smem>>) -> (i32, i32) {
    %c0_i32 = arith.constant 0 : i32
    %c0_i32_0 = arith.constant 0 : i32
    %c0_i32_1 = arith.constant 0 : i32
    return %c0_i32, %c0_i32_0 : i32, i32
  }
  func.func @transform_8(%arg0: i32, %arg1: memref<8xi32, #tpu.memory_space<smem>>) -> (i32, i32, i32) {
    %c0_i32 = arith.constant 0 : i32
    %c0_i32_0 = arith.constant 0 : i32
    %c0_i32_1 = arith.constant 0 : i32
    return %arg0, %c0_i32, %c0_i32_0 : i32, i32, i32
  }
}

module attributes {stable_mosaic.version = 11 : i64} {
  func.func @_encoder_kernel(%arg0: memref<64x128xf32, #tpu.memory_space<vmem>>, %arg1: memref<128x512xf32, #tpu.memory_space<vmem>>, %arg2: memref<128x512xf32, #tpu.memory_space<vmem>>, %arg3: memref<1x512xf32, #tpu.memory_space<vmem>>, %arg4: memref<8x128xf32, #tpu.memory_space<vmem>>, %arg5: memref<8x128xf32, #tpu.memory_space<vmem>>, %arg6: memref<64x512xf32, #tpu.memory_space<vmem>>) attributes {dimension_semantics = [], scalar_prefetch = 0 : i64, scratch_operands = 1 : i64, tpu.core_type = #tpu.core_type<tc>} {
    %c0 = arith.constant 0 : index
    %c0_0 = arith.constant 0 : index
    %0 = vector.load %arg0[%c0, %c0_0] : memref<64x128xf32, #tpu.memory_space<vmem>>, vector<64x128xf32>
    %c0_1 = arith.constant 0 : index
    %c0_2 = arith.constant 0 : index
    %1 = vector.load %arg1[%c0_1, %c0_2] : memref<128x512xf32, #tpu.memory_space<vmem>>, vector<128x512xf32>
    %cst = arith.constant dense<0.000000e+00> : vector<64x512xf32>
    %2 = tpu.matmul %0, %1, %cst {dimension_numbers = #tpu.dot_dimension_numbers<[1], [0], [0], [1], [0, 0, 1, 1], [], []>} : vector<64x128xf32>, vector<128x512xf32>, vector<64x512xf32> -> vector<64x512xf32>
    %c0_3 = arith.constant 0 : index
    %c0_4 = arith.constant 0 : index
    %3 = vector.load %arg3[%c0_3, %c0_4] : memref<1x512xf32, #tpu.memory_space<vmem>>, vector<1x512xf32>
    %4 = vector.broadcast %3 : vector<1x512xf32> to vector<64x512xf32>
    %5 = arith.addf %2, %4 : vector<64x512xf32>
    %c0_5 = arith.constant 0 : index
    %c0_6 = arith.constant 0 : index
    %6 = vector.load %arg6[%c0_5, %c0_6] : memref<64x512xf32, #tpu.memory_space<vmem>>, vector<64x512xf32>
    tpu.vector_store %arg6[%c0_5, %c0_6], %5 {strides = array<i32>} : memref<64x512xf32, #tpu.memory_space<vmem>>, vector<64x512xf32>,
    %c0_7 = arith.constant 0 : index
    %c0_8 = arith.constant 0 : index
    %7 = vector.load %arg2[%c0_7, %c0_8] : memref<128x512xf32, #tpu.memory_space<vmem>>, vector<128x512xf32>
    %cst_9 = arith.constant 0.000000e+00 : f32
    %8 = vector.broadcast %cst_9 : f32 to vector<8x128xf32>
    %cst_10 = arith.constant 0.000000e+00 : f32
    %9 = vector.broadcast %cst_10 : f32 to vector<8x128xf32>
    %c0_11 = arith.constant 0 : index
    %c0_12 = arith.constant 0 : index
    %10 = vector.load %arg6[%c0_11, %c0_12] : memref<64x512xf32, #tpu.memory_space<vmem>>, vector<8x512xf32>
    %cst_13 = arith.constant dense<0.000000e+00> : vector<8x512xf32>
    %11 = tpu.matmul %8, %7, %cst_13 {dimension_numbers = #tpu.dot_dimension_numbers<[1], [0], [0], [1], [0, 0, 1, 1], [], []>} : vector<8x128xf32>, vector<128x512xf32>, vector<8x512xf32> -> vector<8x512xf32>
    %12 = arith.addf %10, %11 : vector<8x512xf32>
    %13 = vector.extract_strided_slice %12 {offsets = [0, 0], sizes = [8, 128], strides = [1, 1]} : vector<8x512xf32> to vector<8x128xf32>
    %14 = arith.negf %13 : vector<8x128xf32>
    %15 = math.exp %14 : vector<8x128xf32>
    %cst_14 = arith.constant 1.000000e+00 : f32
    %16 = vector.broadcast %cst_14 : f32 to vector<8x128xf32>
    %17 = arith.addf %16, %15 : vector<8x128xf32>
    %18 = arith.divf %16, %17 : vector<8x128xf32>
    %19 = vector.extract_strided_slice %12 {offsets = [0, 128], sizes = [8, 128], strides = [1, 1]} : vector<8x512xf32> to vector<8x128xf32>
    %20 = arith.negf %19 : vector<8x128xf32>
    %21 = math.exp %20 : vector<8x128xf32>
    %cst_15 = arith.constant 1.000000e+00 : f32
    %22 = vector.broadcast %cst_15 : f32 to vector<8x128xf32>
    %23 = arith.addf %22, %21 : vector<8x128xf32>
    %24 = arith.divf %22, %23 : vector<8x128xf32>
    %25 = vector.extract_strided_slice %12 {offsets = [0, 256], sizes = [8, 128], strides = [1, 1]} : vector<8x512xf32> to vector<8x128xf32>
    %26 = math.tanh %25 : vector<8x128xf32>
    %27 = vector.extract_strided_slice %12 {offsets = [0, 384], sizes = [8, 128], strides = [1, 1]} : vector<8x512xf32> to vector<8x128xf32>
    %28 = arith.negf %27 : vector<8x128xf32>
    %29 = math.exp %28 : vector<8x128xf32>
    %cst_16 = arith.constant 1.000000e+00 : f32
    %30 = vector.broadcast %cst_16 : f32 to vector<8x128xf32>
    %31 = arith.addf %30, %29 : vector<8x128xf32>
    %32 = arith.divf %30, %31 : vector<8x128xf32>
    %33 = arith.mulf %24, %9 : vector<8x128xf32>
    %34 = arith.mulf %18, %26 : vector<8x128xf32>
    %35 = arith.addf %33, %34 : vector<8x128xf32>
    %36 = math.tanh %35 : vector<8x128xf32>
    %37 = arith.mulf %32, %36 : vector<8x128xf32>
    %c8 = arith.constant 8 : index
    %c0_17 = arith.constant 0 : index
    %38 = vector.load %arg6[%c8, %c0_17] : memref<64x512xf32, #tpu.memory_space<vmem>>, vector<8x512xf32>
    %cst_18 = arith.constant dense<0.000000e+00> : vector<8x512xf32>
    %39 = tpu.matmul %37, %7, %cst_18 {dimension_numbers = #tpu.dot_dimension_numbers<[1], [0], [0], [1], [0, 0, 1, 1], [], []>} : vector<8x128xf32>, vector<128x512xf32>, vector<8x512xf32> -> vector<8x512xf32>
    %40 = arith.addf %38, %39 : vector<8x512xf32>
    %41 = vector.extract_strided_slice %40 {offsets = [0, 0], sizes = [8, 128], strides = [1, 1]} : vector<8x512xf32> to vector<8x128xf32>
    %42 = arith.negf %41 : vector<8x128xf32>
    %43 = math.exp %42 : vector<8x128xf32>
    %cst_19 = arith.constant 1.000000e+00 : f32
    %44 = vector.broadcast %cst_19 : f32 to vector<8x128xf32>
    %45 = arith.addf %44, %43 : vector<8x128xf32>
    %46 = arith.divf %44, %45 : vector<8x128xf32>
    %47 = vector.extract_strided_slice %40 {offsets = [0, 128], sizes = [8, 128], strides = [1, 1]} : vector<8x512xf32> to vector<8x128xf32>
    %48 = arith.negf %47 : vector<8x128xf32>
    %49 = math.exp %48 : vector<8x128xf32>
    %cst_20 = arith.constant 1.000000e+00 : f32
    %50 = vector.broadcast %cst_20 : f32 to vector<8x128xf32>
    %51 = arith.addf %50, %49 : vector<8x128xf32>
    %52 = arith.divf %50, %51 : vector<8x128xf32>
    %53 = vector.extract_strided_slice %40 {offsets = [0, 256], sizes = [8, 128], strides = [1, 1]} : vector<8x512xf32> to vector<8x128xf32>
    %54 = math.tanh %53 : vector<8x128xf32>
    %55 = vector.extract_strided_slice %40 {offsets = [0, 384], sizes = [8, 128], strides = [1, 1]} : vector<8x512xf32> to vector<8x128xf32>
    %56 = arith.negf %55 : vector<8x128xf32>
    %57 = math.exp %56 : vector<8x128xf32>
    %cst_21 = arith.constant 1.000000e+00 : f32
    %58 = vector.broadcast %cst_21 : f32 to vector<8x128xf32>
    %59 = arith.addf %58, %57 : vector<8x128xf32>
    %60 = arith.divf %58, %59 : vector<8x128xf32>
    %61 = arith.mulf %52, %35 : vector<8x128xf32>
    %62 = arith.mulf %46, %54 : vector<8x128xf32>
    %63 = arith.addf %61, %62 : vector<8x128xf32>
    %64 = math.tanh %63 : vector<8x128xf32>
    %65 = arith.mulf %60, %64 : vector<8x128xf32>
    %c16 = arith.constant 16 : index
    %c0_22 = arith.constant 0 : index
    %66 = vector.load %arg6[%c16, %c0_22] : memref<64x512xf32, #tpu.memory_space<vmem>>, vector<8x512xf32>
    %cst_23 = arith.constant dense<0.000000e+00> : vector<8x512xf32>
    %67 = tpu.matmul %65, %7, %cst_23 {dimension_numbers = #tpu.dot_dimension_numbers<[1], [0], [0], [1], [0, 0, 1, 1], [], []>} : vector<8x128xf32>, vector<128x512xf32>, vector<8x512xf32> -> vector<8x512xf32>
    %68 = arith.addf %66, %67 : vector<8x512xf32>
    %69 = vector.extract_strided_slice %68 {offsets = [0, 0], sizes = [8, 128], strides = [1, 1]} : vector<8x512xf32> to vector<8x128xf32>
    %70 = arith.negf %69 : vector<8x128xf32>
    %71 = math.exp %70 : vector<8x128xf32>
    %cst_24 = arith.constant 1.000000e+00 : f32
    %72 = vector.broadcast %cst_24 : f32 to vector<8x128xf32>
    %73 = arith.addf %72, %71 : vector<8x128xf32>
    %74 = arith.divf %72, %73 : vector<8x128xf32>
    %75 = vector.extract_strided_slice %68 {offsets = [0, 128], sizes = [8, 128], strides = [1, 1]} : vector<8x512xf32> to vector<8x128xf32>
    %76 = arith.negf %75 : vector<8x128xf32>
    %77 = math.exp %76 : vector<8x128xf32>
    %cst_25 = arith.constant 1.000000e+00 : f32
    %78 = vector.broadcast %cst_25 : f32 to vector<8x128xf32>
    %79 = arith.addf %78, %77 : vector<8x128xf32>
    %80 = arith.divf %78, %79 : vector<8x128xf32>
    %81 = vector.extract_strided_slice %68 {offsets = [0, 256], sizes = [8, 128], strides = [1, 1]} : vector<8x512xf32> to vector<8x128xf32>
    %82 = math.tanh %81 : vector<8x128xf32>
    %83 = vector.extract_strided_slice %68 {offsets = [0, 384], sizes = [8, 128], strides = [1, 1]} : vector<8x512xf32> to vector<8x128xf32>
    %84 = arith.negf %83 : vector<8x128xf32>
    %85 = math.exp %84 : vector<8x128xf32>
    %cst_26 = arith.constant 1.000000e+00 : f32
    %86 = vector.broadcast %cst_26 : f32 to vector<8x128xf32>
    %87 = arith.addf %86, %85 : vector<8x128xf32>
    %88 = arith.divf %86, %87 : vector<8x128xf32>
    %89 = arith.mulf %80, %63 : vector<8x128xf32>
    %90 = arith.mulf %74, %82 : vector<8x128xf32>
    %91 = arith.addf %89, %90 : vector<8x128xf32>
    %92 = math.tanh %91 : vector<8x128xf32>
    %93 = arith.mulf %88, %92 : vector<8x128xf32>
    %c24 = arith.constant 24 : index
    %c0_27 = arith.constant 0 : index
    %94 = vector.load %arg6[%c24, %c0_27] : memref<64x512xf32, #tpu.memory_space<vmem>>, vector<8x512xf32>
    %cst_28 = arith.constant dense<0.000000e+00> : vector<8x512xf32>
    %95 = tpu.matmul %93, %7, %cst_28 {dimension_numbers = #tpu.dot_dimension_numbers<[1], [0], [0], [1], [0, 0, 1, 1], [], []>} : vector<8x128xf32>, vector<128x512xf32>, vector<8x512xf32> -> vector<8x512xf32>
    %96 = arith.addf %94, %95 : vector<8x512xf32>
    %97 = vector.extract_strided_slice %96 {offsets = [0, 0], sizes = [8, 128], strides = [1, 1]} : vector<8x512xf32> to vector<8x128xf32>
    %98 = arith.negf %97 : vector<8x128xf32>
    %99 = math.exp %98 : vector<8x128xf32>
    %cst_29 = arith.constant 1.000000e+00 : f32
    %100 = vector.broadcast %cst_29 : f32 to vector<8x128xf32>
    %101 = arith.addf %100, %99 : vector<8x128xf32>
    %102 = arith.divf %100, %101 : vector<8x128xf32>
    %103 = vector.extract_strided_slice %96 {offsets = [0, 128], sizes = [8, 128], strides = [1, 1]} : vector<8x512xf32> to vector<8x128xf32>
    %104 = arith.negf %103 : vector<8x128xf32>
    %105 = math.exp %104 : vector<8x128xf32>
    %cst_30 = arith.constant 1.000000e+00 : f32
    %106 = vector.broadcast %cst_30 : f32 to vector<8x128xf32>
    %107 = arith.addf %106, %105 : vector<8x128xf32>
    %108 = arith.divf %106, %107 : vector<8x128xf32>
    %109 = vector.extract_strided_slice %96 {offsets = [0, 256], sizes = [8, 128], strides = [1, 1]} : vector<8x512xf32> to vector<8x128xf32>
    %110 = math.tanh %109 : vector<8x128xf32>
    %111 = vector.extract_strided_slice %96 {offsets = [0, 384], sizes = [8, 128], strides = [1, 1]} : vector<8x512xf32> to vector<8x128xf32>
    %112 = arith.negf %111 : vector<8x128xf32>
    %113 = math.exp %112 : vector<8x128xf32>
    %cst_31 = arith.constant 1.000000e+00 : f32
    %114 = vector.broadcast %cst_31 : f32 to vector<8x128xf32>
    %115 = arith.addf %114, %113 : vector<8x128xf32>
    %116 = arith.divf %114, %115 : vector<8x128xf32>
    %117 = arith.mulf %108, %91 : vector<8x128xf32>
    %118 = arith.mulf %102, %110 : vector<8x128xf32>
    %119 = arith.addf %117, %118 : vector<8x128xf32>
    %120 = math.tanh %119 : vector<8x128xf32>
    %121 = arith.mulf %116, %120 : vector<8x128xf32>
    %c32 = arith.constant 32 : index
    %c0_32 = arith.constant 0 : index
    %122 = vector.load %arg6[%c32, %c0_32] : memref<64x512xf32, #tpu.memory_space<vmem>>, vector<8x512xf32>
    %cst_33 = arith.constant dense<0.000000e+00> : vector<8x512xf32>
    %123 = tpu.matmul %121, %7, %cst_33 {dimension_numbers = #tpu.dot_dimension_numbers<[1], [0], [0], [1], [0, 0, 1, 1], [], []>} : vector<8x128xf32>, vector<128x512xf32>, vector<8x512xf32> -> vector<8x512xf32>
    %124 = arith.addf %122, %123 : vector<8x512xf32>
    %125 = vector.extract_strided_slice %124 {offsets = [0, 0], sizes = [8, 128], strides = [1, 1]} : vector<8x512xf32> to vector<8x128xf32>
    %126 = arith.negf %125 : vector<8x128xf32>
    %127 = math.exp %126 : vector<8x128xf32>
    %cst_34 = arith.constant 1.000000e+00 : f32
    %128 = vector.broadcast %cst_34 : f32 to vector<8x128xf32>
    %129 = arith.addf %128, %127 : vector<8x128xf32>
    %130 = arith.divf %128, %129 : vector<8x128xf32>
    %131 = vector.extract_strided_slice %124 {offsets = [0, 128], sizes = [8, 128], strides = [1, 1]} : vector<8x512xf32> to vector<8x128xf32>
    %132 = arith.negf %131 : vector<8x128xf32>
    %133 = math.exp %132 : vector<8x128xf32>
    %cst_35 = arith.constant 1.000000e+00 : f32
    %134 = vector.broadcast %cst_35 : f32 to vector<8x128xf32>
    %135 = arith.addf %134, %133 : vector<8x128xf32>
    %136 = arith.divf %134, %135 : vector<8x128xf32>
    %137 = vector.extract_strided_slice %124 {offsets = [0, 256], sizes = [8, 128], strides = [1, 1]} : vector<8x512xf32> to vector<8x128xf32>
    %138 = math.tanh %137 : vector<8x128xf32>
    %139 = vector.extract_strided_slice %124 {offsets = [0, 384], sizes = [8, 128], strides = [1, 1]} : vector<8x512xf32> to vector<8x128xf32>
    %140 = arith.negf %139 : vector<8x128xf32>
    %141 = math.exp %140 : vector<8x128xf32>
    %cst_36 = arith.constant 1.000000e+00 : f32
    %142 = vector.broadcast %cst_36 : f32 to vector<8x128xf32>
    %143 = arith.addf %142, %141 : vector<8x128xf32>
    %144 = arith.divf %142, %143 : vector<8x128xf32>
    %145 = arith.mulf %136, %119 : vector<8x128xf32>
    %146 = arith.mulf %130, %138 : vector<8x128xf32>
    %147 = arith.addf %145, %146 : vector<8x128xf32>
    %148 = math.tanh %147 : vector<8x128xf32>
    %149 = arith.mulf %144, %148 : vector<8x128xf32>
    %c40 = arith.constant 40 : index
    %c0_37 = arith.constant 0 : index
    %150 = vector.load %arg6[%c40, %c0_37] : memref<64x512xf32, #tpu.memory_space<vmem>>, vector<8x512xf32>
    %cst_38 = arith.constant dense<0.000000e+00> : vector<8x512xf32>
    %151 = tpu.matmul %149, %7, %cst_38 {dimension_numbers = #tpu.dot_dimension_numbers<[1], [0], [0], [1], [0, 0, 1, 1], [], []>} : vector<8x128xf32>, vector<128x512xf32>, vector<8x512xf32> -> vector<8x512xf32>
    %152 = arith.addf %150, %151 : vector<8x512xf32>
    %153 = vector.extract_strided_slice %152 {offsets = [0, 0], sizes = [8, 128], strides = [1, 1]} : vector<8x512xf32> to vector<8x128xf32>
    %154 = arith.negf %153 : vector<8x128xf32>
    %155 = math.exp %154 : vector<8x128xf32>
    %cst_39 = arith.constant 1.000000e+00 : f32
    %156 = vector.broadcast %cst_39 : f32 to vector<8x128xf32>
    %157 = arith.addf %156, %155 : vector<8x128xf32>
    %158 = arith.divf %156, %157 : vector<8x128xf32>
    %159 = vector.extract_strided_slice %152 {offsets = [0, 128], sizes = [8, 128], strides = [1, 1]} : vector<8x512xf32> to vector<8x128xf32>
    %160 = arith.negf %159 : vector<8x128xf32>
    %161 = math.exp %160 : vector<8x128xf32>
    %cst_40 = arith.constant 1.000000e+00 : f32
    %162 = vector.broadcast %cst_40 : f32 to vector<8x128xf32>
    %163 = arith.addf %162, %161 : vector<8x128xf32>
    %164 = arith.divf %162, %163 : vector<8x128xf32>
    %165 = vector.extract_strided_slice %152 {offsets = [0, 256], sizes = [8, 128], strides = [1, 1]} : vector<8x512xf32> to vector<8x128xf32>
    %166 = math.tanh %165 : vector<8x128xf32>
    %167 = vector.extract_strided_slice %152 {offsets = [0, 384], sizes = [8, 128], strides = [1, 1]} : vector<8x512xf32> to vector<8x128xf32>
    %168 = arith.negf %167 : vector<8x128xf32>
    %169 = math.exp %168 : vector<8x128xf32>
    %cst_41 = arith.constant 1.000000e+00 : f32
    %170 = vector.broadcast %cst_41 : f32 to vector<8x128xf32>
    %171 = arith.addf %170, %169 : vector<8x128xf32>
    %172 = arith.divf %170, %171 : vector<8x128xf32>
    %173 = arith.mulf %164, %147 : vector<8x128xf32>
    %174 = arith.mulf %158, %166 : vector<8x128xf32>
    %175 = arith.addf %173, %174 : vector<8x128xf32>
    %176 = math.tanh %175 : vector<8x128xf32>
    %177 = arith.mulf %172, %176 : vector<8x128xf32>
    %c48 = arith.constant 48 : index
    %c0_42 = arith.constant 0 : index
    %178 = vector.load %arg6[%c48, %c0_42] : memref<64x512xf32, #tpu.memory_space<vmem>>, vector<8x512xf32>
    %cst_43 = arith.constant dense<0.000000e+00> : vector<8x512xf32>
    %179 = tpu.matmul %177, %7, %cst_43 {dimension_numbers = #tpu.dot_dimension_numbers<[1], [0], [0], [1], [0, 0, 1, 1], [], []>} : vector<8x128xf32>, vector<128x512xf32>, vector<8x512xf32> -> vector<8x512xf32>
    %180 = arith.addf %178, %179 : vector<8x512xf32>
    %181 = vector.extract_strided_slice %180 {offsets = [0, 0], sizes = [8, 128], strides = [1, 1]} : vector<8x512xf32> to vector<8x128xf32>
    %182 = arith.negf %181 : vector<8x128xf32>
    %183 = math.exp %182 : vector<8x128xf32>
    %cst_44 = arith.constant 1.000000e+00 : f32
    %184 = vector.broadcast %cst_44 : f32 to vector<8x128xf32>
    %185 = arith.addf %184, %183 : vector<8x128xf32>
    %186 = arith.divf %184, %185 : vector<8x128xf32>
    %187 = vector.extract_strided_slice %180 {offsets = [0, 128], sizes = [8, 128], strides = [1, 1]} : vector<8x512xf32> to vector<8x128xf32>
    %188 = arith.negf %187 : vector<8x128xf32>
    %189 = math.exp %188 : vector<8x128xf32>
    %cst_45 = arith.constant 1.000000e+00 : f32
    %190 = vector.broadcast %cst_45 : f32 to vector<8x128xf32>
    %191 = arith.addf %190, %189 : vector<8x128xf32>
    %192 = arith.divf %190, %191 : vector<8x128xf32>
    %193 = vector.extract_strided_slice %180 {offsets = [0, 256], sizes = [8, 128], strides = [1, 1]} : vector<8x512xf32> to vector<8x128xf32>
    %194 = math.tanh %193 : vector<8x128xf32>
    %195 = vector.extract_strided_slice %180 {offsets = [0, 384], sizes = [8, 128], strides = [1, 1]} : vector<8x512xf32> to vector<8x128xf32>
    %196 = arith.negf %195 : vector<8x128xf32>
    %197 = math.exp %196 : vector<8x128xf32>
    %cst_46 = arith.constant 1.000000e+00 : f32
    %198 = vector.broadcast %cst_46 : f32 to vector<8x128xf32>
    %199 = arith.addf %198, %197 : vector<8x128xf32>
    %200 = arith.divf %198, %199 : vector<8x128xf32>
    %201 = arith.mulf %192, %175 : vector<8x128xf32>
    %202 = arith.mulf %186, %194 : vector<8x128xf32>
    %203 = arith.addf %201, %202 : vector<8x128xf32>
    %204 = math.tanh %203 : vector<8x128xf32>
    %205 = arith.mulf %200, %204 : vector<8x128xf32>
    %c56 = arith.constant 56 : index
    %c0_47 = arith.constant 0 : index
    %206 = vector.load %arg6[%c56, %c0_47] : memref<64x512xf32, #tpu.memory_space<vmem>>, vector<8x512xf32>
    %cst_48 = arith.constant dense<0.000000e+00> : vector<8x512xf32>
    %207 = tpu.matmul %205, %7, %cst_48 {dimension_numbers = #tpu.dot_dimension_numbers<[1], [0], [0], [1], [0, 0, 1, 1], [], []>} : vector<8x128xf32>, vector<128x512xf32>, vector<8x512xf32> -> vector<8x512xf32>
    %208 = arith.addf %206, %207 : vector<8x512xf32>
    %209 = vector.extract_strided_slice %208 {offsets = [0, 0], sizes = [8, 128], strides = [1, 1]} : vector<8x512xf32> to vector<8x128xf32>
    %210 = arith.negf %209 : vector<8x128xf32>
    %211 = math.exp %210 : vector<8x128xf32>
    %cst_49 = arith.constant 1.000000e+00 : f32
    %212 = vector.broadcast %cst_49 : f32 to vector<8x128xf32>
    %213 = arith.addf %212, %211 : vector<8x128xf32>
    %214 = arith.divf %212, %213 : vector<8x128xf32>
    %215 = vector.extract_strided_slice %208 {offsets = [0, 128], sizes = [8, 128], strides = [1, 1]} : vector<8x512xf32> to vector<8x128xf32>
    %216 = arith.negf %215 : vector<8x128xf32>
    %217 = math.exp %216 : vector<8x128xf32>
    %cst_50 = arith.constant 1.000000e+00 : f32
    %218 = vector.broadcast %cst_50 : f32 to vector<8x128xf32>
    %219 = arith.addf %218, %217 : vector<8x128xf32>
    %220 = arith.divf %218, %219 : vector<8x128xf32>
    %221 = vector.extract_strided_slice %208 {offsets = [0, 256], sizes = [8, 128], strides = [1, 1]} : vector<8x512xf32> to vector<8x128xf32>
    %222 = math.tanh %221 : vector<8x128xf32>
    %223 = vector.extract_strided_slice %208 {offsets = [0, 384], sizes = [8, 128], strides = [1, 1]} : vector<8x512xf32> to vector<8x128xf32>
    %224 = arith.negf %223 : vector<8x128xf32>
    %225 = math.exp %224 : vector<8x128xf32>
    %cst_51 = arith.constant 1.000000e+00 : f32
    %226 = vector.broadcast %cst_51 : f32 to vector<8x128xf32>
    %227 = arith.addf %226, %225 : vector<8x128xf32>
    %228 = arith.divf %226, %227 : vector<8x128xf32>
    %229 = arith.mulf %220, %203 : vector<8x128xf32>
    %230 = arith.mulf %214, %222 : vector<8x128xf32>
    %231 = arith.addf %229, %230 : vector<8x128xf32>
    %232 = math.tanh %231 : vector<8x128xf32>
    %233 = arith.mulf %228, %232 : vector<8x128xf32>
    %c0_52 = arith.constant 0 : index
    %c0_53 = arith.constant 0 : index
    %234 = vector.load %arg4[%c0_52, %c0_53] : memref<8x128xf32, #tpu.memory_space<vmem>>, vector<8x128xf32>
    tpu.vector_store %arg4[%c0_52, %c0_53], %233 {strides = array<i32>} : memref<8x128xf32, #tpu.memory_space<vmem>>, vector<8x128xf32>,
    %c0_54 = arith.constant 0 : index
    %c0_55 = arith.constant 0 : index
    %235 = vector.load %arg5[%c0_54, %c0_55] : memref<8x128xf32, #tpu.memory_space<vmem>>, vector<8x128xf32>
    tpu.vector_store %arg5[%c0_54, %c0_55], %231 {strides = array<i32>} : memref<8x128xf32, #tpu.memory_space<vmem>>, vector<8x128xf32>,
    return
  }
}

</mosaic_0001>

<bundles_post_ra>
// kernel: seq2seq_forward.3
= control target key start
LH: loop header
LB: loop body
LE: loop exit
PB: predicated region body
PF: predicated region fallthrough
CT: control target
= control target key end

     0   :  { %s1928_s0 = inlined_call_operand.vmem [shape: s32[8], index: 0, kind: input, shape index: {}]   ;;  %s1929_s1 = inlined_call_operand.vmem [shape: f32[8,8,128], index: 1, kind: input, shape index: {}]   ;;  %s1930_s2 = inlined_call_operand.vmem [shape: f32[8,128], index: 2, kind: input, shape index: {}]   ;;  %s1931_s3 = inlined_call_operand.vmem [shape: f32[8,128], index: 3, kind: input, shape index: {}]   ;;  %s1932_s4 = inlined_call_operand.vmem [shape: f32[256,512], index: 4, kind: input, shape index: {}]   ;;  %s1933_s5 = inlined_call_operand.vmem [shape: f32[1,512], index: 5, kind: input, shape index: {}]   ;;  %s1934_s6 = inlined_call_operand.vmem [shape: f32[128,256], index: 6, kind: input, shape index: {}]   ;;  %s1935_s7 = inlined_call_operand.vmem [shape: f32[1,256], index: 7, kind: input, shape index: {}]   ;;  %s1936_s8 = inlined_call_operand.vmem [shape: f32[256,128], index: 8, kind: input, shape index: {}]   ;;  %s1937_s9 = inlined_call_operand.vmem [shape: f32[7,8,256], index: 9, kind: output, shape index: {}]  }
   0x1   :  { %s14_s11 = sshll.u32 %s1928_s0, 4  ;;  %s15_s11 = int_to_ptr.vmem [resolvable:$true] %s14_s11 }
   0x2   :  { %s1227_s12 = scalar_lea.vmem %s15_s11, 16  ;;  %p1232_p1 = scmp.lt.s32.totalorder %s15_s11, %s15_s11 }
   0x3   :  { %p1228_p0 = scmp.ne.s32.totalorder %s15_s11, %s1227_s12  ;;  %p1233_p2 = scmp.lt.s32.totalorder %s1227_s12, %s1227_s12 }
   0x5   :  { %p1234_p3 = por %p1233_p2, %p1232_p1 }
   0x7   :  { %p1235_p4 = pnand %p1234_p3, %p1228_p0 }
   0x9   :  { %1238 = shalt.err (!%p1235_p4)  }
   0xa   :  { %s1249_s13 = smov [#allocation6]  }
   0xb   :  { %17 = dma.vmem_to_smem %s15_s11, 16, %s1249_s13, [#allocation5] }
   0xc   :  { %1243 = dma.done.wait [#allocation5], 16 }
   0xd   :  { %1244 = vsyncadd [#allocation5], 4294967280 }
   0xe   :  { %19 = sfence }
   0xf   :  { %s1305_s14 = smov 0  }
  0x10 LB: > { %s954_s0 = sadd.s32 4294967295, %s1247_s14   ;;  %p958_p5 = scmp.ge.s32.totalorder %s1247_s14, 1  ;;  %s1247_s14 = sphi %s1305_s14, %s25_s14  }
  0x11   : > { %p268_p6 = scmp.lt.s32.totalorder %s1247_s14, 8 }
  0x13   : > { %p269_p7 = pnand %p958_p5, %p268_p6 }
  0x14   : > { %p301_p8 = scmp.lt.s32.totalorder (!%p269_p7), %s954_s0, 7  ;;  %p305_p9 = scmp.lt.s32.totalorder (!%p269_p7), %s954_s0, 6 }
  0x15   : > { %272 = sbr.rel (%p269_p7) target bundleno = 1255 (0x4e7), region = 52  ;;  %p310_p10 = scmp.eq.s32.totalorder (!%p269_p7), %s954_s0, 0 }
  0x16   : > { %p962_p11 = scmp.ne.s32.totalorder (!%p269_p7), %s954_s0, 0 }
  0x1c   : > { %s302_s15 = scalar_select %p301_p8, %s954_s0, 7 }
  0x1d   : > { %s306_s16 = scalar_select %p305_p9, %s954_s0, 6 }
  0x1e   : > { %s959_s17 = sshll.u32 %s302_s15, 3  ;;  %313 = sbr.rel (%p962_p11) target bundleno = 37 (0x25), region = 56  ;;  %v314_v0 = vld [vmem:[%s1930_s2] sm:$0xff] (!%p962_p11) }
  0x1f   : > { %s304_s20 = scalar_lea.vmem %s1929_s1, %s959_s17  ;;  %s972_s21 = sshll.u32 %s306_s16, 4  ;;  %v316_v1 = vld [vmem:[%s1931_s3] sm:$0xff] (!%p962_p11)  ;;  %315 = vst [vmem:[#allocation2] sm:$0xff] (!%p962_p11), %v314_v0 }
  0x20   : > { %s1319_s24 = scalar_lea.vmem %s1937_s9, %s972_s21  ;;  %317 = vst [vmem:[#allocation3] sm:$0xff] (!%p962_p11), %v316_v1 }
  0x25 PF: > { %s318_s29 = sld [smem:[#allocation6 + %s954_s0]] }
  0x2b   : > { %p319_p12 = scmp.ne.s32.totalorder %s318_s29, 0 }
  0x2d   : > { %p320_p13 = por %p319_p12, %p310_p10 }
  0x2e   : > { %v324_v2 = vld [vmem:[%s304_s20] sm:$0xff] (%p320_p13) }
  0x2f   : > { %323 = sbr.rel (!%p320_p13) target bundleno = 54 (0x36), region = 60  ;;  %325 = vst [vmem:[#allocation4] sm:$0xff] (%p320_p13), %v324_v2 }
  0x36 PF: > { %v329_v3 = vld [vmem:[%s1932_s4 + $0x8] sm:$0xff]  ;;  %v328_v5 = vld [vmem:[%s1932_s4] sm:$0xff]  ;;  %v331_v21 = vld [vmem:[%s1932_s4 + $0x18] sm:$0xff] }
  0x37   : > { %v333_v4 = vld [vmem:[%s1932_s4 + $0x28] sm:$0xff]  ;;  %v332_v7 = vld [vmem:[%s1932_s4 + $0x20] sm:$0xff]  ;;  %v335_v22 = vld [vmem:[%s1932_s4 + $0x38] sm:$0xff] }
  0x38   : > { %v1008_v6 = vpack.c.bf16 %v333_v4, %v329_v3  ;;  %v337_v8 = vld [vmem:[%s1932_s4 + $0x48] sm:$0xff]  ;;  %v1010_v10 = vpack.c.bf16 %v332_v7, %v328_v5  ;;  %v336_v12 = vld [vmem:[%s1932_s4 + $0x40] sm:$0xff]  ;;  %v1072_v24 = vpack.c.bf16 %v335_v22, %v331_v21  ;;  %v330_v25 = vld [vmem:[%s1932_s4 + $0x10] sm:$0xff] }
  0x39   : > { %v341_v9 = vld [vmem:[%s1932_s4 + $0x68] sm:$0xff]  ;;  %v340_v13 = vld [vmem:[%s1932_s4 + $0x60] sm:$0xff]  ;;  %v334_v26 = vld [vmem:[%s1932_s4 + $0x30] sm:$0xff] }
  0x3a   : > { %v1012_v11 = vpack.c.bf16 %v341_v9, %v337_v8  ;;  %v345_v14 = vld [vmem:[%s1932_s4 + $0x88] sm:$0xff]  ;;  %1009 = vmatprep.subr.bf16.mxu0 %v1008_v6  ;;  %v1014_v16 = vpack.c.bf16 %v340_v13, %v336_v12  ;;  %v344_v17 = vld [vmem:[%s1932_s4 + $0x80] sm:$0xff]  ;;  %v1074_v27 = vpack.c.bf16 %v334_v26, %v330_v25  ;;  %1073 = vmatprep.subr.bf16.mxu1 %v1072_v24  ;;  %v339_v29 = vld [vmem:[%s1932_s4 + $0x58] sm:$0xff] }
  0x3b   : > { %v349_v15 = vld [vmem:[%s1932_s4 + $0xa8] sm:$0xff]  ;;  %1011 = vmatpush1.bf16.msra.mxu0 %v1010_v10  ;;  %v348_v18 = vld [vmem:[%s1932_s4 + $0xa0] sm:$0xff]  ;;  %v343_v30 = vld [vmem:[%s1932_s4 + $0x78] sm:$0xff] }
  0x3c   : > { %1013 = vmatprep.subr.bf16.mxu0 %v1012_v11  ;;  %v1016_v19 = vpack.c.bf16 %v349_v15, %v345_v14  ;;  %v353_v20 = vld [vmem:[%s1932_s4 + $0xc8] sm:$0xff]  ;;  %v1018_v28 = vpack.c.bf16 %v348_v18, %v344_v17  ;;  %v338_v31 = vld [vmem:[%s1932_s4 + $0x50] sm:$0xff]  ;;  %v352_v33 = vld [vmem:[%s1932_s4 + $0xc0] sm:$0xff]  ;;  %1075 = vmatpush1.bf16.msra.mxu1 %v1074_v27  ;;  %v1076_v35 = vpack.c.bf16 %v343_v30, %v339_v29 }
  0x3d   : > { %v357_v23 = vld [vmem:[%s1932_s4 + $0xe8] sm:$0xff]  ;;  %v356_v34 = vld [vmem:[%s1932_s4 + $0xe0] sm:$0xff]  ;;  %v342_v36 = vld [vmem:[%s1932_s4 + $0x70] sm:$0xff] }
  0x3e   : > { %v1020_v32 = vpack.c.bf16 %v357_v23, %v353_v20  ;;  %v361_v37 = vld [vmem:[%s1932_s4 + $0x108] sm:$0xff]  ;;  %v1078_v39 = vpack.c.bf16 %v342_v36, %v338_v31  ;;  %v347_v40 = vld [vmem:[%s1932_s4 + $0x98] sm:$0xff]  ;;  %1077 = vmatprep.subr.bf16.mxu1 %v1076_v35  ;;  %v346_v42 = vld [vmem:[%s1932_s4 + $0x90] sm:$0xff]  ;;  %v1022_v44 = vpack.c.bf16 %v356_v34, %v352_v33 }
  0x3f   : > { %1015 = vmatpush1.bf16.msra.mxu0 %v1014_v16  ;;  %v365_v38 = vld [vmem:[%s1932_s4 + $0x128] sm:$0xff]  ;;  %v351_v41 = vld [vmem:[%s1932_s4 + $0xb8] sm:$0xff]  ;;  %v350_v43 = vld [vmem:[%s1932_s4 + $0xb0] sm:$0xff] }
  0x40   : > { %1017 = vmatprep.subr.bf16.mxu0 %v1016_v19  ;;  %v360_v45 = vld [vmem:[%s1932_s4 + $0x100] sm:$0xff]  ;;  %v1080_v47 = vpack.c.bf16 %v351_v41, %v347_v40  ;;  %v1024_v48 = vpack.c.bf16 %v365_v38, %v361_v37  ;;  %1079 = vmatpush1.bf16.msra.mxu1 %v1078_v39  ;;  %v369_v49 = vld [vmem:[%s1932_s4 + $0x148] sm:$0xff]  ;;  %v1082_v50 = vpack.c.bf16 %v350_v43, %v346_v42  ;;  %v355_v51 = vld [vmem:[%s1932_s4 + $0xd8] sm:$0xff] }
  0x41   : > { %v364_v46 = vld [vmem:[%s1932_s4 + $0x120] sm:$0xff]  ;;  %v359_v52 = vld [vmem:[%s1932_s4 + $0xf8] sm:$0xff]  ;;  %v373_v53 = vld [vmem:[%s1932_s4 + $0x168] sm:$0xff] }
  0x42   : > { %1081 = vmatprep.subr.bf16.mxu1 %v1080_v47  ;;  %v1084_v54 = vpack.c.bf16 %v359_v52, %v355_v51  ;;  %v354_v55 = vld [vmem:[%s1932_s4 + $0xd0] sm:$0xff]  ;;  %v1026_v57 = vpack.c.bf16 %v364_v46, %v360_v45  ;;  %v363_v58 = vld [vmem:[%s1932_s4 + $0x118] sm:$0xff]  ;;  %v1028_v60 = vpack.c.bf16 %v373_v53, %v369_v49  ;;  %v368_v61 = vld [vmem:[%s1932_s4 + $0x140] sm:$0xff] }
  0x43   : > { %1019 = vmatpush1.bf16.msra.mxu0 %v1018_v28  ;;  %v358_v56 = vld [vmem:[%s1932_s4 + $0xf0] sm:$0xff]  ;;  %v367_v59 = vld [vmem:[%s1932_s4 + $0x138] sm:$0xff]  ;;  %v372_v62 = vld [vmem:[%s1932_s4 + $0x160] sm:$0xff] }
  0x44   : > { %1021 = vmatprep.subr.bf16.mxu0 %v1020_v32  ;;  %1083 = vmatpush1.bf16.msra.mxu1 %v1082_v50  ;;  %v377_v63 = vld [vmem:[%s1932_s4 + $0x188] sm:$0xff]  ;;  %v1086_v0 = vpack.c.bf16 %v358_v56, %v354_v55  ;;  %v1088_v2 = vpack.c.bf16 %v367_v59, %v363_v58  ;;  %v362_v3 = vld [vmem:[%s1932_s4 + $0x110] sm:$0xff]  ;;  %v371_v5 = vld [vmem:[%s1932_s4 + $0x158] sm:$0xff]  ;;  %v1030_v7 = vpack.c.bf16 %v372_v62, %v368_v61 }
  0x45   : > { %v381_v1 = vld [vmem:[%s1932_s4 + $0x1a8] sm:$0xff]  ;;  %1085 = vmatprep.subr.bf16.mxu1 %v1084_v54  ;;  %v366_v4 = vld [vmem:[%s1932_s4 + $0x130] sm:$0xff]  ;;  %v375_v6 = vld [vmem:[%s1932_s4 + $0x178] sm:$0xff] }
  0x46   : > { %v1032_v8 = vpack.c.bf16 %v381_v1, %v377_v63  ;;  %v376_v9 = vld [vmem:[%s1932_s4 + $0x180] sm:$0xff]  ;;  %v385_v11 = vld [vmem:[%s1932_s4 + $0x1c8] sm:$0xff]  ;;  %v1090_v12 = vpack.c.bf16 %v366_v4, %v362_v3  ;;  %v1092_v14 = vpack.c.bf16 %v375_v6, %v371_v5  ;;  %v370_v15 = vld [vmem:[%s1932_s4 + $0x150] sm:$0xff] }
  0x47   : > { %1023 = vmatpush1.bf16.msra.mxu0 %v1022_v44  ;;  %v380_v10 = vld [vmem:[%s1932_s4 + $0x1a0] sm:$0xff]  ;;  %v389_v13 = vld [vmem:[%s1932_s4 + $0x1e8] sm:$0xff]  ;;  %v374_v16 = vld [vmem:[%s1932_s4 + $0x170] sm:$0xff] }
  0x48   : > { %1025 = vmatprep.subr.bf16.mxu0 %v1024_v48  ;;  %1087 = vmatpush1.bf16.msra.mxu1 %v1086_v0  ;;  %v379_v17 = vld [vmem:[%s1932_s4 + $0x198] sm:$0xff]  ;;  %v1034_v19 = vpack.c.bf16 %v380_v10, %v376_v9  ;;  %v1036_v20 = vpack.c.bf16 %v389_v13, %v385_v11  ;;  %v384_v21 = vld [vmem:[%s1932_s4 + $0x1c0] sm:$0xff]  ;;  %v393_v23 = vld [vmem:[%s1932_s4 + $0x208] sm:$0xff]  ;;  %v1094_v24 = vpack.c.bf16 %v374_v16, %v370_v15 }
  0x49   : > { %1089 = vmatprep.subr.bf16.mxu1 %v1088_v2  ;;  %v383_v18 = vld [vmem:[%s1932_s4 + $0x1b8] sm:$0xff]  ;;  %v388_v22 = vld [vmem:[%s1932_s4 + $0x1e0] sm:$0xff]  ;;  %v397_v25 = vld [vmem:[%s1932_s4 + $0x228] sm:$0xff] }
  0x4a   : > { %v1096_v26 = vpack.c.bf16 %v383_v18, %v379_v17  ;;  %v378_v27 = vld [vmem:[%s1932_s4 + $0x190] sm:$0xff]  ;;  %v387_v29 = vld [vmem:[%s1932_s4 + $0x1d8] sm:$0xff]  ;;  %v1038_v31 = vpack.c.bf16 %v388_v22, %v384_v21  ;;  %v1040_v32 = vpack.c.bf16 %v397_v25, %v393_v23  ;;  %v392_v33 = vld [vmem:[%s1932_s4 + $0x200] sm:$0xff] }
  0x4b   : > { %1027 = vmatpush1.bf16.msra.mxu0 %v1026_v57  ;;  %v382_v28 = vld [vmem:[%s1932_s4 + $0x1b0] sm:$0xff]  ;;  %v391_v30 = vld [vmem:[%s1932_s4 + $0x1f8] sm:$0xff]  ;;  %v396_v34 = vld [vmem:[%s1932_s4 + $0x220] sm:$0xff] }
  0x4c   : > { %1029 = vmatprep.subr.bf16.mxu0 %v1028_v60  ;;  %1091 = vmatpush1.bf16.msra.mxu1 %v1090_v12  ;;  %v401_v35 = vld [vmem:[%s1932_s4 + $0x248] sm:$0xff]  ;;  %v1098_v36 = vpack.c.bf16 %v382_v28, %v378_v27  ;;  %v1100_v38 = vpack.c.bf16 %v391_v30, %v387_v29  ;;  %v386_v39 = vld [vmem:[%s1932_s4 + $0x1d0] sm:$0xff]  ;;  %v395_v41 = vld [vmem:[%s1932_s4 + $0x218] sm:$0xff]  ;;  %v1042_v43 = vpack.c.bf16 %v396_v34, %v392_v33 }
  0x4d   : > { %1093 = vmatprep.subr.bf16.mxu1 %v1092_v14  ;;  %v405_v37 = vld [vmem:[%s1932_s4 + $0x268] sm:$0xff]  ;;  %v390_v40 = vld [vmem:[%s1932_s4 + $0x1f0] sm:$0xff]  ;;  %v399_v42 = vld [vmem:[%s1932_s4 + $0x238] sm:$0xff] }
  0x4e   : > { %v1044_v44 = vpack.c.bf16 %v405_v37, %v401_v35  ;;  %v400_v45 = vld [vmem:[%s1932_s4 + $0x240] sm:$0xff]  ;;  %v409_v47 = vld [vmem:[%s1932_s4 + $0x288] sm:$0xff]  ;;  %v1102_v48 = vpack.c.bf16 %v390_v40, %v386_v39  ;;  %v1104_v50 = vpack.c.bf16 %v399_v42, %v395_v41  ;;  %v394_v51 = vld [vmem:[%s1932_s4 + $0x210] sm:$0xff] }
  0x4f   : > { %1031 = vmatpush1.bf16.msra.mxu0 %v1030_v7  ;;  %v404_v46 = vld [vmem:[%s1932_s4 + $0x260] sm:$0xff]  ;;  %v413_v49 = vld [vmem:[%s1932_s4 + $0x2a8] sm:$0xff]  ;;  %v398_v52 = vld [vmem:[%s1932_s4 + $0x230] sm:$0xff] }
  0x50   : > { %1033 = vmatprep.subr.bf16.mxu0 %v1032_v8  ;;  %1095 = vmatpush1.bf16.msra.mxu1 %v1094_v24  ;;  %v403_v53 = vld [vmem:[%s1932_s4 + $0x258] sm:$0xff]  ;;  %v1046_v55 = vpack.c.bf16 %v404_v46, %v400_v45  ;;  %v408_v56 = vld [vmem:[%s1932_s4 + $0x280] sm:$0xff]  ;;  %v1048_v57 = vpack.c.bf16 %v413_v49, %v409_v47  ;;  %v417_v59 = vld [vmem:[%s1932_s4 + $0x2c8] sm:$0xff]  ;;  %v1106_v61 = vpack.c.bf16 %v398_v52, %v394_v51 }
  0x51   : > { %1097 = vmatprep.subr.bf16.mxu1 %v1096_v26  ;;  %v407_v54 = vld [vmem:[%s1932_s4 + $0x278] sm:$0xff]  ;;  %v412_v58 = vld [vmem:[%s1932_s4 + $0x2a0] sm:$0xff]  ;;  %v421_v60 = vld [vmem:[%s1932_s4 + $0x2e8] sm:$0xff] }
  0x52   : > { %v1108_v62 = vpack.c.bf16 %v407_v54, %v403_v53  ;;  %v402_v63 = vld [vmem:[%s1932_s4 + $0x250] sm:$0xff]  ;;  %v327_v1 = vld [vmem:[#allocation2] sm:$0xff]  ;;  %v411_v2 = vld [vmem:[%s1932_s4 + $0x298] sm:$0xff]  ;;  %v1050_v4 = vpack.c.bf16 %v412_v58, %v408_v56  ;;  %v1052_v5 = vpack.c.bf16 %v421_v60, %v417_v59 }
  0x53   : > { %1035 = vmatpush1.bf16.msra.mxu0 %v1034_v19  ;;  %v406_v0 = vld [vmem:[%s1932_s4 + $0x270] sm:$0xff]  ;;  %v415_v3 = vld [vmem:[%s1932_s4 + $0x2b8] sm:$0xff]  ;;  %542 = vmatprep.mubr.f32.mxu0 %v327_v1  ;;  %v416_v6 = vld [vmem:[%s1932_s4 + $0x2c0] sm:$0xff] }
  0x54   : > { %1037 = vmatprep.subr.bf16.mxu0 %v1036_v20  ;;  %1099 = vmatpush1.bf16.msra.mxu1 %v1098_v36  ;;  %v420_v7 = vld [vmem:[%s1932_s4 + $0x2e0] sm:$0xff]  ;;  %v425_v8 = vld [vmem:[%s1932_s4 + $0x308] sm:$0xff]  ;;  %v1110_v9 = vpack.c.bf16 %v406_v0, %v402_v63  ;;  %v1112_v11 = vpack.c.bf16 %v415_v3, %v411_v2  ;;  %v410_v12 = vld [vmem:[%s1932_s4 + $0x290] sm:$0xff] }
  0x55   : > { %1101 = vmatprep.subr.bf16.mxu1 %v1100_v38  ;;  %613 = vmatprep.mubr.f32.mxu1 %v327_v1  ;;  %v429_v10 = vld [vmem:[%s1932_s4 + $0x328] sm:$0xff]  ;;  %v414_v13 = vld [vmem:[%s1932_s4 + $0x2b0] sm:$0xff]  ;;  %v419_v14 = vld [vmem:[%s1932_s4 + $0x2d8] sm:$0xff]  ;;  %v1054_v16 = vpack.c.bf16 %v420_v7, %v416_v6 }
  0x56   : > { %v423_v15 = vld [vmem:[%s1932_s4 + $0x2f8] sm:$0xff]  ;;  %v1056_v17 = vpack.c.bf16 %v429_v10, %v425_v8  ;;  %v424_v18 = vld [vmem:[%s1932_s4 + $0x300] sm:$0xff]  ;;  %v433_v20 = vld [vmem:[%s1932_s4 + $0x348] sm:$0xff]  ;;  %v1114_v21 = vpack.c.bf16 %v414_v13, %v410_v12 }
  0x57   : > { %1039 = vmatpush1.bf16.msra.mxu0 %v1038_v31  ;;  %v428_v19 = vld [vmem:[%s1932_s4 + $0x320] sm:$0xff]  ;;  %v437_v22 = vld [vmem:[%s1932_s4 + $0x368] sm:$0xff]  ;;  %v1116_v23 = vpack.c.bf16 %v423_v15, %v419_v14  ;;  %v418_v24 = vld [vmem:[%s1932_s4 + $0x2d0] sm:$0xff] }
  0x58   : > { %1041 = vmatprep.subr.bf16.mxu0 %v1040_v32  ;;  %1103 = vmatpush1.bf16.msra.mxu1 %v1102_v48  ;;  %v422_v25 = vld [vmem:[%s1932_s4 + $0x2f0] sm:$0xff]  ;;  %v427_v26 = vld [vmem:[%s1932_s4 + $0x318] sm:$0xff]  ;;  %v1058_v28 = vpack.c.bf16 %v428_v19, %v424_v18  ;;  %v1060_v29 = vpack.c.bf16 %v437_v22, %v433_v20  ;;  %v432_v30 = vld [vmem:[%s1932_s4 + $0x340] sm:$0xff] }
  0x59   : > { %1105 = vmatprep.subr.bf16.mxu1 %v1104_v50  ;;  %v431_v27 = vld [vmem:[%s1932_s4 + $0x338] sm:$0xff]  ;;  %v436_v31 = vld [vmem:[%s1932_s4 + $0x360] sm:$0xff]  ;;  %v441_v32 = vld [vmem:[%s1932_s4 + $0x388] sm:$0xff]  ;;  %v1118_v33 = vpack.c.bf16 %v422_v25, %v418_v24 }
  0x5a   : > { %v445_v34 = vld [vmem:[%s1932_s4 + $0x3a8] sm:$0xff]  ;;  %v1120_v35 = vpack.c.bf16 %v431_v27, %v427_v26  ;;  %v426_v36 = vld [vmem:[%s1932_s4 + $0x310] sm:$0xff]  ;;  %v435_v38 = vld [vmem:[%s1932_s4 + $0x358] sm:$0xff]  ;;  %v1062_v40 = vpack.c.bf16 %v436_v31, %v432_v30 }
  0x5b   : > { %1043 = vmatpush1.bf16.msra.mxu0 %v1042_v43  ;;  %v430_v37 = vld [vmem:[%s1932_s4 + $0x330] sm:$0xff]  ;;  %v439_v39 = vld [vmem:[%s1932_s4 + $0x378] sm:$0xff]  ;;  %v1064_v41 = vpack.c.bf16 %v445_v34, %v441_v32  ;;  %v440_v42 = vld [vmem:[%s1932_s4 + $0x380] sm:$0xff] }
  0x5c   : > { %1045 = vmatprep.subr.bf16.mxu0 %v1044_v44  ;;  %1107 = vmatpush1.bf16.msra.mxu1 %v1106_v61  ;;  %v444_v43 = vld [vmem:[%s1932_s4 + $0x3a0] sm:$0xff]  ;;  %v449_v44 = vld [vmem:[%s1932_s4 + $0x3c8] sm:$0xff]  ;;  %v1122_v45 = vpack.c.bf16 %v430_v37, %v426_v36  ;;  %v1124_v47 = vpack.c.bf16 %v439_v39, %v435_v38  ;;  %v434_v48 = vld [vmem:[%s1932_s4 + $0x350] sm:$0xff] }
  0x5d   : > { %1109 = vmatprep.subr.bf16.mxu1 %v1108_v62  ;;  %v453_v46 = vld [vmem:[%s1932_s4 + $0x3e8] sm:$0xff]  ;;  %v438_v49 = vld [vmem:[%s1932_s4 + $0x370] sm:$0xff]  ;;  %v443_v50 = vld [vmem:[%s1932_s4 + $0x398] sm:$0xff]  ;;  %v1066_v52 = vpack.c.bf16 %v444_v43, %v440_v42 }
  0x5e   : > { %v447_v51 = vld [vmem:[%s1932_s4 + $0x3b8] sm:$0xff]  ;;  %v1068_v53 = vpack.c.bf16 %v453_v46, %v449_v44  ;;  %v448_v54 = vld [vmem:[%s1932_s4 + $0x3c0] sm:$0xff]  ;;  %v1126_v56 = vpack.c.bf16 %v438_v49, %v434_v48  ;;  %v442_v58 = vld [vmem:[%s1932_s4 + $0x390] sm:$0xff]  ;;  %v1250_v48 = vmov 0.0  }
  0x5f   : > { %1047 = vmatpush1.bf16.msra.mxu0 %v1046_v55  ;;  %v452_v55 = vld [vmem:[%s1932_s4 + $0x3e0] sm:$0xff]  ;;  %v446_v59 = vld [vmem:[%s1932_s4 + $0x3b0] sm:$0xff]  ;;  %v451_v60 = vld [vmem:[%s1932_s4 + $0x3d8] sm:$0xff] }
  0x60   : > { %1049 = vmatprep.subr.bf16.mxu0 %v1048_v57  ;;  %1111 = vmatpush1.bf16.msra.mxu1 %v1110_v9  ;;  %v1128_v57 = vpack.c.bf16 %v447_v51, %v443_v50  ;;  %v455_v61 = vld [vmem:[%s1932_s4 + $0x3f8] sm:$0xff]  ;;  %v1070_v62 = vpack.c.bf16 %v452_v55, %v448_v54  ;;  %v1130_v63 = vpack.c.bf16 %v446_v59, %v442_v58  ;;  %v450_v1 = vld [vmem:[%s1932_s4 + $0x3d0] sm:$0xff]  ;;  %v647_v8 = vld [vmem:[%s1934_s6] sm:$0xff]  ;;  %v458_v54 = vlaneseq }
  0x61   : > { %1113 = vmatprep.subr.bf16.mxu1 %v1112_v11  ;;  %v1132_v0 = vpack.c.bf16 %v455_v61, %v451_v60  ;;  %v454_v2 = vld [vmem:[%s1932_s4 + $0x3f0] sm:$0xff]  ;;  %v650_v6 = vld [vmem:[%s1934_s6 + $0x18] sm:$0xff]  ;;  %v652_v11 = vld [vmem:[%s1934_s6 + $0x28] sm:$0xff] }
  0x62   : > { %v326_v3 = vld [vmem:[#allocation4] sm:$0xff]  ;;  %v654_v12 = vld [vmem:[%s1934_s6 + $0x38] sm:$0xff]  ;;  %v651_v14 = vld [vmem:[%s1934_s6 + $0x20] sm:$0xff]  ;;  %v459_v55 = vshrl.u32 %v458_v54, 7 }
  0x63   : > { %1051 = vmatpush1.bf16.msra.mxu0 %v1050_v4  ;;  %v1134_v4 = vpack.c.bf16 %v454_v2, %v450_v1  ;;  %v649_v9 = vld [vmem:[%s1934_s6 + $0x10] sm:$0xff]  ;;  %v1140_v13 = vpack.c.bf16 %v654_v12, %v652_v11  ;;  %v658_v18 = vld [vmem:[%s1934_s6 + $0x58] sm:$0xff]  ;;  %v655_v20 = vld [vmem:[%s1934_s6 + $0x40] sm:$0xff] }
  0x64   : > { %1053 = vmatprep.subr.bf16.mxu0 %v1052_v5  ;;  %1115 = vmatpush1.bf16.msra.mxu1 %v1114_v21  ;;  %v648_v5 = vld [vmem:[%s1934_s6 + $0x8] sm:$0xff]  ;;  %v1138_v10 = vpack.c.bf16 %v649_v9, %v647_v8  ;;  %v653_v15 = vld [vmem:[%s1934_s6 + $0x30] sm:$0xff]  ;;  %v662_v24 = vld [vmem:[%s1934_s6 + $0x78] sm:$0xff]  ;;  %v464_v58 = vsub.s32 1, %v459_v55  ;;  %v472_v61 = vsub.s32 3, %v459_v55 }
  0x65   : > { %1117 = vmatprep.subr.bf16.mxu1 %v1116_v23  ;;  %v1136_v7 = vpack.c.bf16 %v650_v6, %v648_v5  ;;  %v657_v21 = vld [vmem:[%s1934_s6 + $0x50] sm:$0xff]  ;;  %v660_v23 = vld [vmem:[%s1934_s6 + $0x68] sm:$0xff]  ;;  %v659_v26 = vld [vmem:[%s1934_s6 + $0x60] sm:$0xff]  ;;  %v468_v5 = vsub.s32 2, %v459_v55 }
  0x66   : > { %v1146_v22 = vpack.c.bf16 %v657_v21, %v655_v20  ;;  %v1148_v25 = vpack.c.bf16 %v662_v24, %v660_v23  ;;  %v661_v27 = vld [vmem:[%s1934_s6 + $0x70] sm:$0xff]  ;;  %v666_v30 = vld [vmem:[%s1934_s6 + $0x98] sm:$0xff]  ;;  %v663_v32 = vld [vmem:[%s1934_s6 + $0x80] sm:$0xff] }
  0x67   : > { %1055 = vmatpush1.bf16.msra.mxu0 %v1054_v16  ;;  %v1142_v16 = vpack.c.bf16 %v653_v15, %v651_v14  ;;  %v670_v36 = vld [vmem:[%s1934_s6 + $0xb8] sm:$0xff]  ;;  %v667_v38 = vld [vmem:[%s1934_s6 + $0xa0] sm:$0xff]  ;;  %v669_v39 = vld [vmem:[%s1934_s6 + $0xb0] sm:$0xff] }
  0x68   : > { %1057 = vmatprep.subr.bf16.mxu0 %v1056_v17  ;;  %1119 = vmatpush1.bf16.msra.mxu1 %v1118_v33  ;;  %v656_v17 = vld [vmem:[%s1934_s6 + $0x48] sm:$0xff]  ;;  %v665_v33 = vld [vmem:[%s1934_s6 + $0x90] sm:$0xff]  ;;  %v674_v42 = vld [vmem:[%s1934_s6 + $0xd8] sm:$0xff] }
  0x69   : > { %1121 = vmatprep.subr.bf16.mxu1 %v1120_v35  ;;  %v1144_v19 = vpack.c.bf16 %v658_v18, %v656_v17  ;;  %v1154_v34 = vpack.c.bf16 %v665_v33, %v663_v32  ;;  %v668_v35 = vld [vmem:[%s1934_s6 + $0xa8] sm:$0xff]  ;;  %v671_v43 = vld [vmem:[%s1934_s6 + $0xc0] sm:$0xff] }
  0x6a   : > { %v1156_v37 = vpack.c.bf16 %v670_v36, %v668_v35  ;;  %v676_v46 = vld [vmem:[%s1934_s6 + $0xe8] sm:$0xff]  ;;  %v675_v51 = vld [vmem:[%s1934_s6 + $0xe0] sm:$0xff]  ;;  %v1816_v36 = vand.u32 127, %v458_v54  ;;  %v799_v54 = vld [vmem:[%s1936_s8 + $0x18] sm:$0xff] }
  0x6b   : > { %1059 = vmatpush1.bf16.msra.mxu0 %v1058_v28  ;;  %v1150_v28 = vpack.c.bf16 %v661_v27, %v659_v26  ;;  %v639_v18 = vld [vmem:[#allocation3] sm:$0xff] }
  0x6c   : > { %1061 = vmatprep.subr.bf16.mxu0 %v1060_v29  ;;  %1123 = vmatpush1.bf16.msra.mxu1 %v1122_v45  ;;  %v664_v29 = vld [vmem:[%s1934_s6 + $0x88] sm:$0xff]  ;;  %v673_v45 = vld [vmem:[%s1934_s6 + $0xd0] sm:$0xff] }
  0x6d   : > { %1125 = vmatprep.subr.bf16.mxu1 %v1124_v47  ;;  %v1152_v31 = vpack.c.bf16 %v666_v30, %v664_v29  ;;  %v678_v47 = vld [vmem:[%s1934_s6 + $0xf8] sm:$0xff]  ;;  %v1162_v49 = vpack.c.bf16 %v673_v45, %v671_v43  ;;  %v813_v45 = vld [vmem:[%s1936_s8 + $0x88] sm:$0xff] }
  0x6e   : > { %v1164_v50 = vpack.c.bf16 %v678_v47, %v676_v46  ;;  %v796_v46 = vld [vmem:[%s1936_s8] sm:$0xff] }
  0x6f   : > { %1063 = vmatpush1.bf16.msra.mxu0 %v1062_v40  ;;  %v1158_v40 = vpack.c.bf16 %v669_v39, %v667_v38 }
  0x70   : > { %1065 = vmatprep.subr.bf16.mxu0 %v1064_v41  ;;  %1127 = vmatpush1.bf16.msra.mxu1 %v1126_v56  ;;  %v672_v41 = vld [vmem:[%s1934_s6 + $0xc8] sm:$0xff]  ;;  %v460_v56 = vsub.s32 0, %v459_v55  ;;  %v816_v55 = vld [vmem:[%s1936_s8 + $0xa0] sm:$0xff] }
  0x71   : > { %1129 = vmatprep.subr.bf16.mxu1 %v1128_v57  ;;  %v1160_v44 = vpack.c.bf16 %v674_v42, %v672_v41  ;;  %v456_v57 = vld [vmem:[%s1933_s5] sm:$0xf] }
  0x72   : > { %v461_v59 = vrot.slane %v456_v57, %v460_v56  ;;  %v465_v60 = vrot.slane %v456_v57, %v464_v58  ;;  %v469_v9 = vrot.slane %v456_v57, %v468_v5 }
  0x73   : > { %1067 = vmatpush1.bf16.msra.mxu0 %v1066_v52  ;;  %v677_v52 = vld [vmem:[%s1934_s6 + $0xf0] sm:$0xff] }
  0x74   : > { %1069 = vmatprep.subr.bf16.mxu0 %v1068_v53  ;;  %1131 = vmatpush1.bf16.msra.mxu1 %v1130_v63  ;;  %v1166_v53 = vpack.c.bf16 %v677_v52, %v675_v51 }
  0x75   : > { %1133 = vmatprep.subr.bf16.mxu1 %v1132_v0 }
  0x77   : > { %1071 = vmatpush1.bf16.msra.mxu0 %v1070_v62 }
  0x78   : > { %1135 = vmatpush1.bf16.msra.mxu1 %v1134_v4  ;;  %1137 = vmatprep.subr.bf16.mxu0 %v1136_v7 }
  0x7a   : > { %543 = vmatmul.mubr.f32.vlgmr.msra.gmra.mrb[0].mxu0 %v326_v3 }
  0x7b   : > { %614 = vmatmul.mubr.f32.vlgmr.msra.gmra.mrb[0].mxu1 %v326_v3  ;;  %1139 = vmatpush1.bf16.msra.mxu0 %v1138_v10  ;;  %v473_v3 = vrot.slane %v456_v57, %v472_v61  ;;  %v818_v61 = vld [vmem:[%s1936_s8 + $0xb0] sm:$0xff] }
  0x7c   : > { %1141 = vmatprep.subr.bf16.mxu0 %v1140_v13  ;;  %755 = vmatprep.mubr.f32.mxu0 %v1250_v48  ;;  %v797_v48 = vld [vmem:[%s1936_s8 + $0x8] sm:$0xff] }
  0x7d   : > { %v1170_v51 = vpack.c.bf16 %v797_v48, %v796_v46 }
  0x7f   : > { %1143 = vmatpush1.bf16.msra.mxu0 %v1142_v16 }
  0x80   : > { %1145 = vmatprep.subr.bf16.mxu0 %v1144_v19 }
  0x83   : > { %1147 = vmatpush1.bf16.msra.mxu0 %v1146_v22 }
  0x84   : > { %1149 = vmatprep.subr.bf16.mxu0 %v1148_v25 }
  0x87   : > { %1151 = vmatpush1.bf16.msra.mxu0 %v1150_v28  ;;  %v679_v28 = vld [vmem:[%s1935_s7] sm:$0x3] }
  0x88   : > { %1153 = vmatprep.subr.bf16.mxu0 %v1152_v31  ;;  %v684_v29 = vrot.slane %v679_v28, %v460_v56  ;;  %v688_v30 = vrot.slane %v679_v28, %v464_v58  ;;  %v817_v56 = vld [vmem:[%s1936_s8 + $0xa8] sm:$0xff] }
  0x89   : > { %v1176_v58 = vpack.c.bf16 %v817_v56, %v816_v55 }
  0x8b   : > { %1155 = vmatpush1.bf16.msra.mxu0 %v1154_v34 }
  0x8c   : > { %1157 = vmatprep.subr.bf16.mxu0 %v1156_v37  ;;  %v1819_v37 = vadd.s32 128, %v1816_v36 }
  0x8f   : > { %1159 = vmatpush1.bf16.msra.mxu0 %v1158_v40 }
  0x90   : > { %1161 = vmatprep.subr.bf16.mxu0 %v1160_v44  ;;  %v812_v44 = vld [vmem:[%s1936_s8 + $0x80] sm:$0xff] }
  0x91   : > { %v1168_v47 = vpack.c.bf16 %v813_v45, %v812_v44 }
  0x93   : > { %1163 = vmatpush1.bf16.msra.mxu0 %v1162_v49  ;;  %v814_v49 = vld [vmem:[%s1936_s8 + $0x90] sm:$0xff]  ;;  %1169 = vmatprep.subr.bf16.mxu1 %v1168_v47 }
  0x94   : > { %1165 = vmatprep.subr.bf16.mxu0 %v1164_v50  ;;  %v815_v50 = vld [vmem:[%s1936_s8 + $0x98] sm:$0xff]  ;;  %1171 = vmatpush3.bf16.msra.mxu1 %v1170_v51 }
  0x95   : > { %v1172_v52 = vpack.c.bf16 %v815_v50, %v814_v49 }
  0x97   : > { %1167 = vmatpush1.bf16.msra.mxu0 %v1166_v53  ;;  %v798_v53 = vld [vmem:[%s1936_s8 + $0x10] sm:$0xff]  ;;  %1173 = vmatprep.subr.bf16.mxu1 %v1172_v52 }
  0x98   : > { %v1174_v57 = vpack.c.bf16 %v799_v54, %v798_v53 }
  0x9a   : > { %1175 = vmatpush3.bf16.msra.mxu1 %v1174_v57 }
  0x9b   : > { %1177 = vmatprep.subr.bf16.mxu1 %v1176_v58 }
 0x14d   : > { %v544_v62 = vpop.f32.mrb[0].mxu0 }
 0x14e   : > { %v545_v63 = vadd.f32 %v544_v62, %v461_v59  ;;  %v546_v0 = vpop.f32.mrb[1].mxu0  ;;  %v615_v6 = vpop.f32.mrb[0].mxu1  ;;  %v800_v59 = vld [vmem:[%s1936_s8 + $0x20] sm:$0xff]  ;;  %v819_v62 = vld [vmem:[%s1936_s8 + $0xb8] sm:$0xff] }
 0x14f   : > { %v547_v1 = vadd.f32 %v546_v0, %v465_v60  ;;  %v617_v7 = vpop.f32.mrb[1].mxu1  ;;  %v616_v11 = vadd.f32 %v615_v6, %v469_v9  ;;  %v801_v60 = vld [vmem:[%s1936_s8 + $0x28] sm:$0xff]  ;;  %v1180_v0 = vpack.c.bf16 %v819_v62, %v818_v61  ;;  %v822_v9 = vld [vmem:[%s1936_s8 + $0xd0] sm:$0xff] }
 0x150   : > { %v963_v2 = vmul.f32 -1.442695, %v545_v63  ;;  %v618_v8 = vadd.f32 %v617_v7, %v473_v3  ;;  %v1178_v63 = vpack.c.bf16 %v801_v60, %v800_v59  ;;  %v820_v3 = vld [vmem:[%s1936_s8 + $0xc0] sm:$0xff] }
 0x151   : > { %v964_v4 = vmul.f32 -1.442695, %v547_v1  ;;  %v802_v1 = vld [vmem:[%s1936_s8 + $0x30] sm:$0xff]  ;;  %v804_v7 = vld [vmem:[%s1936_s8 + $0x40] sm:$0xff] }
 0x152   : > { %1211 = vpow2.f32 %v963_v2  ;;  %v965_v10 = vmul.f32 -1.442695, %v618_v8  ;;  %v803_v2 = vld [vmem:[%s1936_s8 + $0x38] sm:$0xff]  ;;  %1179 = vmatpush3.bf16.msra.mxu1 %v1178_v63  ;;  %v805_v8 = vld [vmem:[%s1936_s8 + $0x48] sm:$0xff] }
 0x153   : > { %1213 = vpow2.f32 %v964_v4  ;;  %v821_v4 = vld [vmem:[%s1936_s8 + $0xc8] sm:$0xff]  ;;  %v1182_v5 = vpack.c.bf16 %v803_v2, %v802_v1  ;;  %1181 = vmatprep.subr.bf16.mxu1 %v1180_v0 }
 0x154   : > { %1215 = vpow2.f32 %v965_v10  ;;  %v1184_v6 = vpack.c.bf16 %v821_v4, %v820_v3  ;;  %v823_v10 = vld [vmem:[%s1936_s8 + $0xd8] sm:$0xff] }
 0x155   : > { %1217 = vtanh.f32 %v616_v11  ;;  %v1186_v11 = vpack.c.bf16 %v805_v8, %v804_v7 }
 0x156   : > { %1183 = vmatpush3.bf16.msra.mxu1 %v1182_v5 }
 0x157   : > { %1185 = vmatprep.subr.bf16.mxu1 %v1184_v6 }
 0x15a   : > { %1187 = vmatpush3.bf16.msra.mxu1 %v1186_v11 }
 0x15c   : > { %v1212_v12 = vpop.eup %1211 }
 0x15d   : > { %v1214_v13 = vpop.eup %1213  ;;  %v623_v14 = vadd.f32 1.0, %v1212_v12  ;;  %v1188_v12 = vpack.c.bf16 %v823_v10, %v822_v9 }
 0x15e   : > { %v629_v15 = vadd.f32 1.0, %v1214_v13  ;;  %v1216_v16 = vpop.eup %1215  ;;  %v806_v13 = vld [vmem:[%s1936_s8 + $0x50] sm:$0xff] }
 0x15f   : > { %1219 = vrcp.f32 %v623_v14  ;;  %v1218_v17 = vpop.eup %1217  ;;  %v636_v20 = vadd.f32 1.0, %v1216_v16  ;;  %v807_v14 = vld [vmem:[%s1936_s8 + $0x58] sm:$0xff]  ;;  %v825_v16 = vld [vmem:[%s1936_s8 + $0xe8] sm:$0xff]  ;;  %1189 = vmatprep.subr.bf16.mxu1 %v1188_v12 }
 0x160   : > { %1221 = vrcp.f32 %v629_v15  ;;  %v824_v15 = vld [vmem:[%s1936_s8 + $0xe0] sm:$0xff] }
 0x161   : > { %1223 = vrcp.f32 %v636_v20  ;;  %v809_v20 = vld [vmem:[%s1936_s8 + $0x68] sm:$0xff] }
 0x169   : > { %v1220_v19 = vpop.eup %1219 }
 0x16a   : > { %v1222_v21 = vpop.eup %1221  ;;  %v641_v22 = vmul.f32 %v1220_v19, %v1218_v17  ;;  %v1190_v17 = vpack.c.bf16 %v807_v14, %v806_v13  ;;  %v808_v19 = vld [vmem:[%s1936_s8 + $0x60] sm:$0xff] }
 0x16b   : > { %v640_v23 = vmul.f32 %v1222_v21, %v639_v18  ;;  %v1224_v25 = vpop.eup %1223  ;;  %v1192_v18 = vpack.c.bf16 %v825_v16, %v824_v15  ;;  %v1194_v21 = vpack.c.bf16 %v809_v20, %v808_v19 }
 0x16c   : > { %1191 = vmatpush3.bf16.msra.mxu1 %v1190_v17 }
 0x16d   : > { %v642_v24 = vadd.f32 %v641_v22, %v640_v23  ;;  %1193 = vmatprep.subr.bf16.mxu1 %v1192_v18 }
 0x16f   : > { %1225 = vtanh.f32 %v642_v24  ;;  %646 = vst [vmem:[#allocation3] sm:$0xff] %v642_v24 }
 0x170   : > { %1195 = vmatpush3.bf16.msra.mxu1 %v1194_v21 }
 0x179   : > { %v1226_v26 = vpop.eup %1225 }
 0x17a   : > { %v644_v27 = vmul.f32 %v1226_v26, %v1224_v25  ;;  %v826_v26 = vld [vmem:[%s1936_s8 + $0xf0] sm:$0xff] }
 0x17c   : > { %645 = vst [vmem:[#allocation2] sm:$0xff] %v644_v27  ;;  %756 = vmatmul.mubr.f32.vlgmr.msra.gmra.mrb[2].mxu0 %v644_v27  ;;  %v827_v27 = vld [vmem:[%s1936_s8 + $0xf8] sm:$0xff] }
 0x17d   : > { %v1196_v28 = vpack.c.bf16 %v827_v27, %v826_v26 }
 0x17f   : > { %1197 = vmatprep.subr.bf16.mxu1 %v1196_v28 }
 0x24f   : > { %v757_v31 = vpop.f32.mrb[2].mxu0 }
 0x250   : > { %v758_v32 = vadd.f32 %v757_v31, %v684_v29  ;;  %v759_v33 = vpop.f32.mrb[3].mxu0  ;;  %v810_v29 = vld [vmem:[%s1936_s8 + $0x70] sm:$0xff] }
 0x251   : > { %v760_v34 = vadd.f32 %v759_v33, %v688_v30  ;;  %v811_v30 = vld [vmem:[%s1936_s8 + $0x78] sm:$0xff] }
 0x252   : > { %762 = vst [vmem:[%s1319_s24] sm:$0xff] %v758_v32  ;;  %v1198_v31 = vpack.c.bf16 %v811_v30, %v810_v29 }
 0x253   : > { %763 = vst [vmem:[%s1319_s24 + $0x8] sm:$0xff] %v760_v34  ;;  %v767_v35 = vmax.f32 %v758_v32, %v760_v34 }
 0x254   : > { %1199 = vmatpush3.bf16.msra.mxu1 %v1198_v31 }
 0x255   : > { %768 = vmax.xlane.f32.xlu0 %v767_v35 }
 0x2e2   : > { %v769_v38 = vpop.xlane.xlu0 %768 }
 0x2e3   : > { %vm770_vm0 = vcmp.eq.f32.partialorder %v758_v32, %v769_v38  ;;  %vm771_vm1 = vcmp.eq.f32.partialorder %v760_v34, %v769_v38 }
 0x2e4   : > { %v772_v39 = vsel %vm770_vm0, %v1816_v36, 256  ;;  %v773_v40 = vsel %vm771_vm1, %v1819_v37, 256 }
 0x2e5   : > { %vm774_vm2 = vcmp.lt.s32.totalorder %v772_v39, %v773_v40 }
 0x2e6   : > { %v775_v41 = vsel %vm774_vm2, %v772_v39, %v773_v40  ;;  %v1251_v39 = vmov 1.0  }
 0x2e7   : > { %v777_v42 = vshra.s32 %v775_v41, 16  ;;  %v776_v22 = vand.u32 65535, %v775_v41 }
 0x2e9   : > { %v1823_v43 = vcvt.s32.f32 %v777_v42  ;;  %v778_v24 = vcvt.s32.f32 %v776_v22 }
 0x2eb   : > { %780 = vmin.xlane.f32.xlu0 %v1823_v43 }
 0x378   : > { %v781_v23 = vpop.xlane.xlu0 %780 }
 0x379   : > { %vm782_vm3 = vcmp.eq.f32.partialorder %v1823_v43, %v781_v23  ;;  %v787_v32 = vcvt.f32.s32 %v781_v23 }
 0x37a   : > { %v783_v25 = vsel %vm782_vm3, %v778_v24, inf }
 0x37b   : > { %784 = vmin.xlane.f32.xlu1 %v783_v25  ;;  %v788_v34 = vshll.u32 %v787_v32, 16 }
 0x408   : > { %v785_v33 = vpop.xlane.xlu1 %784 }
 0x409   : > { %v786_v35 = vcvt.f32.s32 %v785_v33 }
 0x40b   : > { %v789_v38 = vadd.s32 %v788_v34, %v786_v35 }
 0x40d   : > { %vm790_vm4 = vcmp.eq.s32.totalorder %v1816_v36, %v789_v38  ;;  %vm791_vm5 = vcmp.eq.s32.totalorder %v1819_v37, %v789_v38 }
 0x40e   : > { %968 = vmatprep.mubr.msk.f32.mxu1 %vm791_vm5, %v1251_v39 }
 0x40f   : > { %969 = vmatmul.mubr.msk.f32.vlgmr.msra.gmra.mrb[2].mxu1 %vm790_vm4, %v1251_v39 }
 0x4e2   : > { %v1005_v40 = vpop.f32.mrb[2].mxu1 }
 0x4e3   : > { %v1006_v41 = vpop.f32.mrb[3].mxu1 }
 0x4e4   : > { %v1007_v42 = vadd.f32 %v1006_v41, %v1005_v40 }
 0x4e6   : > { %898 = vst [vmem:[#allocation4] sm:$0xff] %v1007_v42 }
 0x4e7 PF: > { %s25_s14 = sadd.s32 1, %s1247_s14  }
 0x4e8   : > { %p22_p0 = scmp.ge.s32.totalorder %s25_s14, 9  }
 0x4ea   :  { %24 = sbr.rel (!%p22_p0) target bundleno = 16 (0x10), region = 90 }

// kernel: seq2seq_forward.2
= control target key start
LH: loop header
LB: loop body
LE: loop exit
PB: predicated region body
PF: predicated region fallthrough
CT: control target
= control target key end

     0   :  { %11 = vsyncpa [#allocation4], 0  ;;  %s2672_s18 = smov [#allocation3]   ;;  %s3361_s0 = inlined_call_operand.vmem [shape: f32[64,128], index: 0, kind: input, shape index: {}]   ;;  %s3362_s1 = inlined_call_operand.vmem [shape: f32[128,512], index: 1, kind: input, shape index: {}]   ;;  %s3363_s2 = inlined_call_operand.hbm [shape: f32[128,512], index: 2, kind: input, shape index: {}]   ;;  %s3364_s3 = inlined_call_operand.vmem [shape: f32[1,512], index: 3, kind: input, shape index: {}]   ;;  %s3365_s4 = inlined_call_operand.vmem [shape: f32[8,128], index: 4, kind: output, shape index: {0}]   ;;  %s3366_s5 = inlined_call_operand.vmem [shape: f32[8,128], index: 5, kind: output, shape index: {1}]  }
   0x1   :  { %s21_s19 = sshll.u32 %s2672_s18, 4  ;;  %s2648_s22 = scalar_lea.hbm %s3363_s2, 8192  ;;  %s22_s19 = int_to_ptr.vmem [resolvable:$true] %s21_s19 }
   0x2   :  { %p2649_p0 = scmp.ne.s32.totalorder %s3363_s2, %s2648_s22  ;;  %p2652_p1 = scmp.lt.u32.totalorder %s2648_s22, %s3363_s2 }
   0x4   :  { %p2654_p2 = pnand %p2652_p1, %p2649_p0 }
   0x6   :  { %2657 = shalt.err (!%p2654_p2)
}
   0x7   :  { %s2658_s27 = scalar_lea.vmem %s22_s19, 8192  ;;  %p2663_p4 = scmp.lt.s32.totalorder %s22_s19, %s22_s19 }
   0x8   :  { %p2659_p3 = scmp.ne.s32.totalorder %s22_s19, %s2658_s27  ;;  %p2664_p5 = scmp.lt.s32.totalorder %s2658_s27, %s2658_s27 }
   0xa   :  { %p2665_p6 = por %p2664_p5, %p2663_p4 }
   0xc   :  { %p2666_p7 = pnand %p2665_p6, %p2659_p3 }
   0xe   :  { %2669 = shalt.err (!%p2666_p7)
}
   0xf   :  { %s2673_s28 = smov 512   ;;  %s2674_s29 = smov 32  }
  0x10   :  { %27 = dma.hbm_to_vmem [thread:$0]  %s3363_s2, 8192, %s22_s19, [#allocation4], %s2673_s28, %s2673_s28, %s2674_s29  }
  0x11   :  { %2670 = dma.done.wait [#allocation4], 8192  }
  0x12   :  { %2671 = vsyncadd [#allocation4], 4294959104  ;;  %v2675_v0 = vmov 0.0   ;;  %v42_v1 = vld [vmem:[%s3362_s1 + $0x8] sm:$0xff]  ;;  %v44_v3 = vld [vmem:[%s3362_s1 + $0x18] sm:$0xff] }
  0x13   :  { %191 = vmatprep.mubr.f32.mxu0 %v2675_v0  ;;  %304 = vmatprep.mubr.f32.mxu1 %v2675_v0  ;;  %v46_v2 = vld [vmem:[%s3362_s1 + $0x28] sm:$0xff]  ;;  %v48_v5 = vld [vmem:[%s3362_s1 + $0x38] sm:$0xff]  ;;  %v41_v6 = vld [vmem:[%s3362_s1] sm:$0xff] }
  0x14   :  { %v1876_v4 = vpack.c.bf16 %v46_v2, %v42_v1  ;;  %v45_v7 = vld [vmem:[%s3362_s1 + $0x20] sm:$0xff]  ;;  %v1908_v8 = vpack.c.bf16 %v48_v5, %v44_v3  ;;  %v43_v10 = vld [vmem:[%s3362_s1 + $0x10] sm:$0xff]  ;;  %v50_v12 = vld [vmem:[%s3362_s1 + $0x48] sm:$0xff] }
  0x15   :  { %v1878_v9 = vpack.c.bf16 %v45_v7, %v41_v6  ;;  %v47_v11 = vld [vmem:[%s3362_s1 + $0x30] sm:$0xff]  ;;  %v54_v14 = vld [vmem:[%s3362_s1 + $0x68] sm:$0xff]  ;;  %v52_v15 = vld [vmem:[%s3362_s1 + $0x58] sm:$0xff] }
  0x16   :  { %1877 = vmatprep.subr.bf16.mxu0 %v1876_v4  ;;  %v1910_v13 = vpack.c.bf16 %v47_v11, %v43_v10  ;;  %v56_v16 = vld [vmem:[%s3362_s1 + $0x78] sm:$0xff]  ;;  %1909 = vmatprep.subr.bf16.mxu1 %v1908_v8  ;;  %v1880_v17 = vpack.c.bf16 %v54_v14, %v50_v12  ;;  %v49_v19 = vld [vmem:[%s3362_s1 + $0x40] sm:$0xff]  ;;  %v51_v21 = vld [vmem:[%s3362_s1 + $0x50] sm:$0xff] }
  0x17   :  { %1879 = vmatpush1.bf16.msra.mxu0 %v1878_v9  ;;  %v1912_v18 = vpack.c.bf16 %v56_v16, %v52_v15  ;;  %v53_v20 = vld [vmem:[%s3362_s1 + $0x60] sm:$0xff]  ;;  %v55_v23 = vld [vmem:[%s3362_s1 + $0x70] sm:$0xff]  ;;  %v58_v24 = vld [vmem:[%s3362_s1 + $0x88] sm:$0xff] }
  0x18   :  { %1911 = vmatpush1.bf16.msra.mxu1 %v1910_v13  ;;  %v1882_v22 = vpack.c.bf16 %v53_v20, %v49_v19  ;;  %v62_v25 = vld [vmem:[%s3362_s1 + $0xa8] sm:$0xff]  ;;  %1881 = vmatprep.subr.bf16.mxu0 %v1880_v17  ;;  %v1914_v26 = vpack.c.bf16 %v55_v23, %v51_v21  ;;  %v60_v28 = vld [vmem:[%s3362_s1 + $0x98] sm:$0xff]  ;;  %v57_v30 = vld [vmem:[%s3362_s1 + $0x80] sm:$0xff] }
  0x19   :  { %1913 = vmatprep.subr.bf16.mxu1 %v1912_v18  ;;  %v1884_v27 = vpack.c.bf16 %v62_v25, %v58_v24  ;;  %v64_v29 = vld [vmem:[%s3362_s1 + $0xb8] sm:$0xff]  ;;  %v61_v32 = vld [vmem:[%s3362_s1 + $0xa0] sm:$0xff]  ;;  %v59_v33 = vld [vmem:[%s3362_s1 + $0x90] sm:$0xff] }
  0x1a   :  { %v1916_v31 = vpack.c.bf16 %v64_v29, %v60_v28  ;;  %v63_v34 = vld [vmem:[%s3362_s1 + $0xb0] sm:$0xff]  ;;  %v1886_v35 = vpack.c.bf16 %v61_v32, %v57_v30  ;;  %v66_v36 = vld [vmem:[%s3362_s1 + $0xc8] sm:$0xff]  ;;  %v68_v38 = vld [vmem:[%s3362_s1 + $0xd8] sm:$0xff] }
  0x1b   :  { %1883 = vmatpush1.bf16.msra.mxu0 %v1882_v22  ;;  %v70_v37 = vld [vmem:[%s3362_s1 + $0xe8] sm:$0xff]  ;;  %v1918_v39 = vpack.c.bf16 %v63_v34, %v59_v33  ;;  %v72_v41 = vld [vmem:[%s3362_s1 + $0xf8] sm:$0xff]  ;;  %v65_v42 = vld [vmem:[%s3362_s1 + $0xc0] sm:$0xff] }
  0x1c   :  { %1915 = vmatpush1.bf16.msra.mxu1 %v1914_v26  ;;  %1885 = vmatprep.subr.bf16.mxu0 %v1884_v27  ;;  %v1888_v40 = vpack.c.bf16 %v70_v37, %v66_v36  ;;  %v69_v43 = vld [vmem:[%s3362_s1 + $0xe0] sm:$0xff]  ;;  %v1920_v44 = vpack.c.bf16 %v72_v41, %v68_v38  ;;  %v67_v45 = vld [vmem:[%s3362_s1 + $0xd0] sm:$0xff]  ;;  %v74_v47 = vld [vmem:[%s3362_s1 + $0x108] sm:$0xff] }
  0x1d   :  { %1917 = vmatprep.subr.bf16.mxu1 %v1916_v31  ;;  %v71_v46 = vld [vmem:[%s3362_s1 + $0xf0] sm:$0xff]  ;;  %v78_v48 = vld [vmem:[%s3362_s1 + $0x128] sm:$0xff]  ;;  %v76_v49 = vld [vmem:[%s3362_s1 + $0x118] sm:$0xff]  ;;  %v1890_v51 = vpack.c.bf16 %v69_v43, %v65_v42 }
  0x1e   :  { %v80_v50 = vld [vmem:[%s3362_s1 + $0x138] sm:$0xff]  ;;  %v1922_v52 = vpack.c.bf16 %v71_v46, %v67_v45  ;;  %v1892_v53 = vpack.c.bf16 %v78_v48, %v74_v47  ;;  %v73_v54 = vld [vmem:[%s3362_s1 + $0x100] sm:$0xff]  ;;  %v75_v56 = vld [vmem:[%s3362_s1 + $0x110] sm:$0xff] }
  0x1f   :  { %1887 = vmatpush1.bf16.msra.mxu0 %v1886_v35  ;;  %v77_v55 = vld [vmem:[%s3362_s1 + $0x120] sm:$0xff]  ;;  %v1924_v57 = vpack.c.bf16 %v80_v50, %v76_v49  ;;  %v79_v58 = vld [vmem:[%s3362_s1 + $0x130] sm:$0xff]  ;;  %v82_v59 = vld [vmem:[%s3362_s1 + $0x148] sm:$0xff] }
  0x20   :  { %1919 = vmatpush1.bf16.msra.mxu1 %v1918_v39  ;;  %1889 = vmatprep.subr.bf16.mxu0 %v1888_v40  ;;  %v86_v60 = vld [vmem:[%s3362_s1 + $0x168] sm:$0xff]  ;;  %v84_v61 = vld [vmem:[%s3362_s1 + $0x158] sm:$0xff]  ;;  %v1894_v63 = vpack.c.bf16 %v77_v55, %v73_v54  ;;  %v1926_v1 = vpack.c.bf16 %v79_v58, %v75_v56  ;;  %v81_v3 = vld [vmem:[%s3362_s1 + $0x140] sm:$0xff] }
  0x21   :  { %1921 = vmatprep.subr.bf16.mxu1 %v1920_v44  ;;  %v88_v62 = vld [vmem:[%s3362_s1 + $0x178] sm:$0xff]  ;;  %v1896_v2 = vpack.c.bf16 %v86_v60, %v82_v59  ;;  %v85_v4 = vld [vmem:[%s3362_s1 + $0x160] sm:$0xff]  ;;  %v83_v5 = vld [vmem:[%s3362_s1 + $0x150] sm:$0xff] }
  0x22   :  { %v1928_v6 = vpack.c.bf16 %v88_v62, %v84_v61  ;;  %v87_v7 = vld [vmem:[%s3362_s1 + $0x170] sm:$0xff]  ;;  %v90_v8 = vld [vmem:[%s3362_s1 + $0x188] sm:$0xff]  ;;  %v92_v10 = vld [vmem:[%s3362_s1 + $0x198] sm:$0xff]  ;;  %v1898_v12 = vpack.c.bf16 %v85_v4, %v81_v3 }
  0x23   :  { %1891 = vmatpush1.bf16.msra.mxu0 %v1890_v51  ;;  %v94_v9 = vld [vmem:[%s3362_s1 + $0x1a8] sm:$0xff]  ;;  %v96_v11 = vld [vmem:[%s3362_s1 + $0x1b8] sm:$0xff]  ;;  %v1930_v13 = vpack.c.bf16 %v87_v7, %v83_v5  ;;  %v89_v15 = vld [vmem:[%s3362_s1 + $0x180] sm:$0xff] }
  0x24   :  { %1923 = vmatpush1.bf16.msra.mxu1 %v1922_v52  ;;  %1893 = vmatprep.subr.bf16.mxu0 %v1892_v53  ;;  %v1900_v14 = vpack.c.bf16 %v94_v9, %v90_v8  ;;  %v93_v16 = vld [vmem:[%s3362_s1 + $0x1a0] sm:$0xff]  ;;  %v91_v17 = vld [vmem:[%s3362_s1 + $0x190] sm:$0xff]  ;;  %v1932_v18 = vpack.c.bf16 %v96_v11, %v92_v10  ;;  %v98_v20 = vld [vmem:[%s3362_s1 + $0x1c8] sm:$0xff] }
  0x25   :  { %1925 = vmatprep.subr.bf16.mxu1 %v1924_v57  ;;  %v95_v19 = vld [vmem:[%s3362_s1 + $0x1b0] sm:$0xff]  ;;  %v102_v21 = vld [vmem:[%s3362_s1 + $0x1e8] sm:$0xff]  ;;  %v100_v22 = vld [vmem:[%s3362_s1 + $0x1d8] sm:$0xff]  ;;  %v1902_v24 = vpack.c.bf16 %v93_v16, %v89_v15 }
  0x26   :  { %v104_v23 = vld [vmem:[%s3362_s1 + $0x1f8] sm:$0xff]  ;;  %v1934_v25 = vpack.c.bf16 %v95_v19, %v91_v17  ;;  %v1904_v26 = vpack.c.bf16 %v102_v21, %v98_v20  ;;  %v97_v27 = vld [vmem:[%s3362_s1 + $0x1c0] sm:$0xff]  ;;  %v99_v29 = vld [vmem:[%s3362_s1 + $0x1d0] sm:$0xff] }
  0x27   :  { %1895 = vmatpush1.bf16.msra.mxu0 %v1894_v63  ;;  %v101_v28 = vld [vmem:[%s3362_s1 + $0x1e0] sm:$0xff]  ;;  %v1936_v30 = vpack.c.bf16 %v104_v23, %v100_v22  ;;  %v103_v31 = vld [vmem:[%s3362_s1 + $0x1f0] sm:$0xff]  ;;  %v386_v32 = vld [vmem:[#allocation3 + $0x8] sm:$0xff] }
  0x28   :  { %1927 = vmatpush1.bf16.msra.mxu1 %v1926_v1  ;;  %1897 = vmatprep.subr.bf16.mxu0 %v1896_v2  ;;  %v390_v33 = vld [vmem:[#allocation3 + $0x28] sm:$0xff]  ;;  %v388_v34 = vld [vmem:[#allocation3 + $0x18] sm:$0xff]  ;;  %v1906_v36 = vpack.c.bf16 %v101_v28, %v97_v27  ;;  %v1938_v37 = vpack.c.bf16 %v103_v31, %v99_v29  ;;  %v385_v39 = vld [vmem:[#allocation3] sm:$0xff] }
  0x29   :  { %1929 = vmatprep.subr.bf16.mxu1 %v1928_v6  ;;  %v392_v35 = vld [vmem:[#allocation3 + $0x38] sm:$0xff]  ;;  %v2912_v38 = vpack.c.bf16 %v390_v33, %v386_v32  ;;  %v389_v40 = vld [vmem:[#allocation3 + $0x20] sm:$0xff]  ;;  %v387_v42 = vld [vmem:[#allocation3 + $0x10] sm:$0xff] }
  0x2a   :  { %v2914_v41 = vpack.c.bf16 %v392_v35, %v388_v34  ;;  %v391_v43 = vld [vmem:[#allocation3 + $0x30] sm:$0xff]  ;;  %v394_v44 = vld [vmem:[#allocation3 + $0x48] sm:$0xff]  ;;  %v33_v46 = vld [vmem:[%s3361_s0] sm:$0xff]  ;;  %v2919_v47 = vpack.c.bf16 %v389_v40, %v385_v39 }
  0x2b   :  { %1899 = vmatpush1.bf16.msra.mxu0 %v1898_v12  ;;  %v398_v45 = vld [vmem:[#allocation3 + $0x68] sm:$0xff]  ;;  %v396_v48 = vld [vmem:[#allocation3 + $0x58] sm:$0xff]  ;;  %v2922_v50 = vpack.c.bf16 %v391_v43, %v387_v42  ;;  %v393_v51 = vld [vmem:[#allocation3 + $0x40] sm:$0xff] }
  0x2c   :  { %1931 = vmatpush1.bf16.msra.mxu1 %v1930_v13  ;;  %1901 = vmatprep.subr.bf16.mxu0 %v1900_v14  ;;  %v400_v49 = vld [vmem:[#allocation3 + $0x78] sm:$0xff]  ;;  %v397_v52 = vld [vmem:[#allocation3 + $0x60] sm:$0xff]  ;;  %v2925_v53 = vpack.c.bf16 %v398_v45, %v394_v44  ;;  %v395_v54 = vld [vmem:[#allocation3 + $0x50] sm:$0xff] }
  0x2d   :  { %1933 = vmatprep.subr.bf16.mxu1 %v1932_v18  ;;  %v399_v55 = vld [vmem:[#allocation3 + $0x70] sm:$0xff]  ;;  %v2927_v56 = vpack.c.bf16 %v400_v49, %v396_v48  ;;  %v402_v57 = vld [vmem:[#allocation3 + $0x88] sm:$0xff]  ;;  %v2933_v60 = vpack.c.bf16 %v397_v52, %v393_v51  ;;  %v404_v61 = vld [vmem:[#allocation3 + $0x98] sm:$0xff] }
  0x2e   :  { %v406_v58 = vld [vmem:[#allocation3 + $0xa8] sm:$0xff]  ;;  %v408_v62 = vld [vmem:[#allocation3 + $0xb8] sm:$0xff]  ;;  %v2937_v63 = vpack.c.bf16 %v399_v55, %v395_v54  ;;  %v401_v1 = vld [vmem:[#allocation3 + $0x80] sm:$0xff] }
  0x2f   :  { %1903 = vmatpush1.bf16.msra.mxu0 %v1902_v24  ;;  %v34_v59 = vld [vmem:[%s3361_s0 + $0x8] sm:$0xff]  ;;  %v405_v2 = vld [vmem:[#allocation3 + $0xa0] sm:$0xff]  ;;  %v2941_v3 = vpack.c.bf16 %v406_v58, %v402_v57  ;;  %v403_v4 = vld [vmem:[#allocation3 + $0x90] sm:$0xff]  ;;  %v2944_v6 = vpack.c.bf16 %v408_v62, %v404_v61 }
  0x30   :  { %1935 = vmatpush1.bf16.msra.mxu1 %v1934_v25  ;;  %1905 = vmatprep.subr.bf16.mxu0 %v1904_v26  ;;  %v407_v5 = vld [vmem:[#allocation3 + $0xb0] sm:$0xff]  ;;  %v410_v7 = vld [vmem:[#allocation3 + $0xc8] sm:$0xff]  ;;  %v2950_v10 = vpack.c.bf16 %v405_v2, %v401_v1  ;;  %v412_v11 = vld [vmem:[#allocation3 + $0xd8] sm:$0xff] }
  0x31   :  { %1937 = vmatprep.subr.bf16.mxu1 %v1936_v30  ;;  %v414_v8 = vld [vmem:[#allocation3 + $0xe8] sm:$0xff]  ;;  %v35_v9 = vld [vmem:[%s3361_s0 + $0x10] sm:$0xff]  ;;  %v416_v12 = vld [vmem:[#allocation3 + $0xf8] sm:$0xff]  ;;  %v2954_v13 = vpack.c.bf16 %v407_v5, %v403_v4 }
  0x32   :  { %v409_v14 = vld [vmem:[#allocation3 + $0xc0] sm:$0xff]  ;;  %v2958_v16 = vpack.c.bf16 %v414_v8, %v410_v7  ;;  %v411_v17 = vld [vmem:[#allocation3 + $0xd0] sm:$0xff]  ;;  %v2961_v19 = vpack.c.bf16 %v416_v12, %v412_v11  ;;  %v418_v20 = vld [vmem:[#allocation3 + $0x108] sm:$0xff] }
  0x33   :  { %1907 = vmatpush1.bf16.msra.mxu0 %v1906_v36  ;;  %v413_v15 = vld [vmem:[#allocation3 + $0xe0] sm:$0xff]  ;;  %v415_v18 = vld [vmem:[#allocation3 + $0xf0] sm:$0xff]  ;;  %v422_v21 = vld [vmem:[#allocation3 + $0x128] sm:$0xff] }
  0x34   :  { %1939 = vmatpush1.bf16.msra.mxu1 %v1938_v37  ;;  %1941 = vmatprep.subr.bf16.mxu0 %v2912_v38  ;;  %v36_v22 = vld [vmem:[%s3361_s0 + $0x18] sm:$0xff]  ;;  %v2967_v23 = vpack.c.bf16 %v413_v15, %v409_v14  ;;  %v2971_v26 = vpack.c.bf16 %v415_v18, %v411_v17  ;;  %v417_v27 = vld [vmem:[#allocation3 + $0x100] sm:$0xff]  ;;  %v2975_v29 = vpack.c.bf16 %v422_v21, %v418_v20  ;;  %v419_v30 = vld [vmem:[#allocation3 + $0x110] sm:$0xff] }
  0x35   :  { %1973 = vmatprep.subr.bf16.mxu1 %v2914_v41  ;;  %v420_v24 = vld [vmem:[#allocation3 + $0x118] sm:$0xff]  ;;  %v421_v28 = vld [vmem:[#allocation3 + $0x120] sm:$0xff]  ;;  %v423_v31 = vld [vmem:[#allocation3 + $0x130] sm:$0xff] }
  0x36   :  { %192 = vmatmul.mubr.f32.vlgmr.msra.gmra.mrb[0].mxu0 %v33_v46  ;;  %v424_v25 = vld [vmem:[#allocation3 + $0x138] sm:$0xff]  ;;  %v426_v33 = vld [vmem:[#allocation3 + $0x148] sm:$0xff]  ;;  %v37_v35 = vld [vmem:[%s3361_s0 + $0x20] sm:$0xff]  ;;  %v2984_v36 = vpack.c.bf16 %v421_v28, %v417_v27  ;;  %v2988_v40 = vpack.c.bf16 %v423_v31, %v419_v30  ;;  %v107_v28 = vlaneseq }
  0x37   :  { %305 = vmatmul.mubr.f32.vlgmr.msra.gmra.mrb[0].mxu1 %v33_v46  ;;  %1943 = vmatpush1.bf16.msra.mxu0 %v2919_v47  ;;  %v2978_v32 = vpack.c.bf16 %v424_v25, %v420_v24  ;;  %v430_v34 = vld [vmem:[#allocation3 + $0x168] sm:$0xff]  ;;  %v428_v37 = vld [vmem:[#allocation3 + $0x158] sm:$0xff]  ;;  %v425_v42 = vld [vmem:[#allocation3 + $0x140] sm:$0xff] }
  0x38   :  { %1975 = vmatpush1.bf16.msra.mxu1 %v2922_v50  ;;  %197 = vmatprep.mubr.f32.mxu0 %v2675_v0  ;;  %v432_v39 = vld [vmem:[#allocation3 + $0x178] sm:$0xff]  ;;  %v429_v43 = vld [vmem:[#allocation3 + $0x160] sm:$0xff]  ;;  %v2992_v44 = vpack.c.bf16 %v430_v34, %v426_v33  ;;  %v427_v45 = vld [vmem:[#allocation3 + $0x150] sm:$0xff]  ;;  %v108_v30 = vshrl.u32 %v107_v28, 7 }
  0x39   :  { %310 = vmatprep.mubr.f32.mxu1 %v2675_v0  ;;  %1945 = vmatprep.subr.bf16.mxu0 %v2925_v53  ;;  %v431_v46 = vld [vmem:[#allocation3 + $0x170] sm:$0xff]  ;;  %v2995_v48 = vpack.c.bf16 %v432_v39, %v428_v37  ;;  %v434_v49 = vld [vmem:[#allocation3 + $0x188] sm:$0xff]  ;;  %v3001_v54 = vpack.c.bf16 %v429_v43, %v425_v42  ;;  %v436_v55 = vld [vmem:[#allocation3 + $0x198] sm:$0xff] }
  0x3a   :  { %198 = vmatmul.mubr.f32.gmra.mrb[2].mxu0 %v34_v59  ;;  %1977 = vmatprep.subr.bf16.mxu1 %v2927_v56  ;;  %v438_v51 = vld [vmem:[#allocation3 + $0x1a8] sm:$0xff]  ;;  %v440_v57 = vld [vmem:[#allocation3 + $0x1b8] sm:$0xff]  ;;  %v3005_v58 = vpack.c.bf16 %v431_v46, %v427_v45  ;;  %v437_v61 = vld [vmem:[#allocation3 + $0x1a0] sm:$0xff]  ;;  %v109_v31 = vsub.s32 0, %v108_v30  ;;  %v113_v34 = vsub.s32 1, %v108_v30  ;;  %v121_v42 = vsub.s32 3, %v108_v30 }
  0x3b   :  { %311 = vmatmul.mubr.f32.gmra.mrb[2].mxu1 %v34_v59  ;;  %1947 = vmatpush1.bf16.msra.mxu0 %v2933_v60  ;;  %v38_v52 = vld [vmem:[%s3361_s0 + $0x28] sm:$0xff]  ;;  %v433_v59 = vld [vmem:[#allocation3 + $0x180] sm:$0xff]  ;;  %v3009_v62 = vpack.c.bf16 %v438_v51, %v434_v49  ;;  %v435_v1 = vld [vmem:[#allocation3 + $0x190] sm:$0xff]  ;;  %v3012_v4 = vpack.c.bf16 %v440_v57, %v436_v55 }
  0x3c   :  { %1979 = vmatpush1.bf16.msra.mxu1 %v2937_v63  ;;  %203 = vmatprep.mubr.f32.mxu0 %v2675_v0  ;;  %v439_v2 = vld [vmem:[#allocation3 + $0x1b0] sm:$0xff]  ;;  %v442_v5 = vld [vmem:[#allocation3 + $0x1c8] sm:$0xff]  ;;  %v444_v11 = vld [vmem:[#allocation3 + $0x1d8] sm:$0xff] }
  0x3d   :  { %316 = vmatprep.mubr.f32.mxu1 %v2675_v0  ;;  %1949 = vmatprep.subr.bf16.mxu0 %v2941_v3  ;;  %v446_v7 = vld [vmem:[#allocation3 + $0x1e8] sm:$0xff]  ;;  %v39_v8 = vld [vmem:[%s3361_s0 + $0x30] sm:$0xff]  ;;  %v448_v12 = vld [vmem:[#allocation3 + $0x1f8] sm:$0xff]  ;;  %v3022_v14 = vpack.c.bf16 %v439_v2, %v435_v1 }
  0x3e   :  { %204 = vmatmul.mubr.f32.gmra.mrb[4].mxu0 %v35_v9  ;;  %1981 = vmatprep.subr.bf16.mxu1 %v2944_v6  ;;  %v441_v15 = vld [vmem:[#allocation3 + $0x1c0] sm:$0xff]  ;;  %v3026_v18 = vpack.c.bf16 %v446_v7, %v442_v5  ;;  %v443_v20 = vld [vmem:[#allocation3 + $0x1d0] sm:$0xff]  ;;  %v40_v24 = vld [vmem:[%s3361_s0 + $0x38] sm:$0xff] }
  0x3f   :  { %317 = vmatmul.mubr.f32.gmra.mrb[4].mxu1 %v35_v9  ;;  %1951 = vmatpush1.bf16.msra.mxu0 %v2950_v10  ;;  %v3018_v9 = vpack.c.bf16 %v437_v61, %v433_v59  ;;  %v445_v17 = vld [vmem:[#allocation3 + $0x1e0] sm:$0xff]  ;;  %v447_v21 = vld [vmem:[#allocation3 + $0x1f0] sm:$0xff]  ;;  %v117_v59 = vsub.s32 2, %v108_v30 }
  0x40   :  { %1983 = vmatpush1.bf16.msra.mxu1 %v2954_v13  ;;  %209 = vmatprep.mubr.f32.mxu0 %v2675_v0  ;;  %v3035_v25 = vpack.c.bf16 %v445_v17, %v441_v15  ;;  %v3039_v27 = vpack.c.bf16 %v447_v21, %v443_v20  ;;  %v105_v33 = vld [vmem:[%s3364_s3] sm:$0xf] }
  0x41   :  { %322 = vmatprep.mubr.f32.mxu1 %v2675_v0  ;;  %1953 = vmatprep.subr.bf16.mxu0 %v2958_v16  ;;  %v3091_v37 = vrot.slane %v105_v33, %v113_v34  ;;  %v3095_v57 = vrot.slane %v105_v33, %v121_v42  ;;  %v3098_v1 = vrot.slane %v105_v33, %v117_v59 }
  0x42   :  { %210 = vmatmul.mubr.f32.gmra.mrb[6].mxu0 %v36_v22  ;;  %1985 = vmatprep.subr.bf16.mxu1 %v2961_v19 }
  0x43   :  { %323 = vmatmul.mubr.f32.gmra.mrb[6].mxu1 %v36_v22  ;;  %1955 = vmatpush1.bf16.msra.mxu0 %v2967_v23  ;;  %v3029_v22 = vpack.c.bf16 %v448_v12, %v444_v11 }
  0x44   :  { %1987 = vmatpush1.bf16.msra.mxu1 %v2971_v26  ;;  %215 = vmatprep.mubr.f32.mxu0 %v2675_v0 }
  0x45   :  { %328 = vmatprep.mubr.f32.mxu1 %v2675_v0  ;;  %1957 = vmatprep.subr.bf16.mxu0 %v2975_v29 }
  0x46   :  { %216 = vmatmul.mubr.f32.gmra.mrb[8].mxu0 %v37_v35  ;;  %1989 = vmatprep.subr.bf16.mxu1 %v2978_v32 }
  0x47   :  { %329 = vmatmul.mubr.f32.gmra.mrb[8].mxu1 %v37_v35  ;;  %1959 = vmatpush1.bf16.msra.mxu0 %v2984_v36  ;;  %v3089_v35 = vrot.slane %v105_v33, %v109_v31 }
  0x48   :  { %1991 = vmatpush1.bf16.msra.mxu1 %v2988_v40  ;;  %221 = vmatprep.mubr.f32.mxu0 %v2675_v0 }
  0x49   :  { %334 = vmatprep.mubr.f32.mxu1 %v2675_v0  ;;  %1961 = vmatprep.subr.bf16.mxu0 %v2992_v44 }
  0x4a   :  { %222 = vmatmul.mubr.f32.gmra.mrb[10].mxu0 %v38_v52  ;;  %1993 = vmatprep.subr.bf16.mxu1 %v2995_v48 }
  0x4b   :  { %335 = vmatmul.mubr.f32.gmra.mrb[10].mxu1 %v38_v52  ;;  %1963 = vmatpush1.bf16.msra.mxu0 %v3001_v54 }
  0x4c   :  { %1995 = vmatpush1.bf16.msra.mxu1 %v3005_v58  ;;  %227 = vmatprep.mubr.f32.mxu0 %v2675_v0 }
  0x4d   :  { %340 = vmatprep.mubr.f32.mxu1 %v2675_v0  ;;  %1965 = vmatprep.subr.bf16.mxu0 %v3009_v62 }
  0x4e   :  { %228 = vmatmul.mubr.f32.gmra.mrb[12].mxu0 %v39_v8  ;;  %1997 = vmatprep.subr.bf16.mxu1 %v3012_v4 }
  0x4f   :  { %341 = vmatmul.mubr.f32.gmra.mrb[12].mxu1 %v39_v8  ;;  %1967 = vmatpush1.bf16.msra.mxu0 %v3018_v9 }
  0x50   :  { %1999 = vmatpush1.bf16.msra.mxu1 %v3022_v14  ;;  %233 = vmatprep.mubr.f32.mxu0 %v2675_v0 }
  0x51   :  { %346 = vmatprep.mubr.f32.mxu1 %v2675_v0  ;;  %1969 = vmatprep.subr.bf16.mxu0 %v3026_v18 }
  0x52   :  { %234 = vmatmul.mubr.f32.gmra.mrb[14].mxu0 %v40_v24  ;;  %2001 = vmatprep.subr.bf16.mxu1 %v3029_v22 }
  0x53   :  { %347 = vmatmul.mubr.f32.gmra.mrb[14].mxu1 %v40_v24  ;;  %1971 = vmatpush1.bf16.msra.mxu0 %v3035_v25 }
  0x54   :  { %2003 = vmatpush1.bf16.msra.mxu1 %v3039_v27  ;;  %517 = vmatprep.mubr.f32.mxu0 %v2675_v0 }
  0x55   :  { %588 = vmatprep.mubr.f32.mxu1 %v2675_v0  ;;  %2005 = vmatprep.subr.bf16.mxu0 %v2912_v38 }
  0x56   :  { %518 = vmatmul.mubr.f32.vlgmr.msra.gmra.mrb[0].mxu0 %v2675_v0  ;;  %2037 = vmatprep.subr.bf16.mxu1 %v2914_v41 }
  0x57   :  { %589 = vmatmul.mubr.f32.vlgmr.msra.gmra.mrb[0].mxu1 %v2675_v0  ;;  %2007 = vmatpush1.bf16.msra.mxu0 %v2919_v47 }
  0x58   :  { %2039 = vmatpush1.bf16.msra.mxu1 %v2922_v50  ;;  %2009 = vmatprep.subr.bf16.mxu0 %v2925_v53 }
  0x59   :  { %2041 = vmatprep.subr.bf16.mxu1 %v2927_v56  ;;  %691 = vmatprep.mubr.f32.mxu0 %v2675_v0 }
  0x5a   :  { %762 = vmatprep.mubr.f32.mxu1 %v2675_v0 }
  0x5b   :  { %2011 = vmatpush1.bf16.msra.mxu0 %v2933_v60 }
  0x5c   :  { %2043 = vmatpush1.bf16.msra.mxu1 %v2937_v63  ;;  %2013 = vmatprep.subr.bf16.mxu0 %v2941_v3 }
  0x5d   :  { %2045 = vmatprep.subr.bf16.mxu1 %v2944_v6 }
  0x5f   :  { %2015 = vmatpush1.bf16.msra.mxu0 %v2950_v10 }
  0x60   :  { %2047 = vmatpush1.bf16.msra.mxu1 %v2954_v13  ;;  %2017 = vmatprep.subr.bf16.mxu0 %v2958_v16 }
  0x61   :  { %2049 = vmatprep.subr.bf16.mxu1 %v2961_v19 }
  0x63   :  { %2019 = vmatpush1.bf16.msra.mxu0 %v2967_v23 }
  0x64   :  { %2051 = vmatpush1.bf16.msra.mxu1 %v2971_v26  ;;  %2021 = vmatprep.subr.bf16.mxu0 %v2975_v29 }
  0x65   :  { %2053 = vmatprep.subr.bf16.mxu1 %v2978_v32 }
  0x67   :  { %2023 = vmatpush1.bf16.msra.mxu0 %v2984_v36 }
  0x68   :  { %2055 = vmatpush1.bf16.msra.mxu1 %v2988_v40  ;;  %2025 = vmatprep.subr.bf16.mxu0 %v2992_v44 }
  0x69   :  { %2057 = vmatprep.subr.bf16.mxu1 %v2995_v48 }
  0x6b   :  { %2027 = vmatpush1.bf16.msra.mxu0 %v3001_v54 }
  0x6c   :  { %2059 = vmatpush1.bf16.msra.mxu1 %v3005_v58  ;;  %2029 = vmatprep.subr.bf16.mxu0 %v3009_v62 }
  0x6d   :  { %2061 = vmatprep.subr.bf16.mxu1 %v3012_v4 }
  0x6f   :  { %2031 = vmatpush1.bf16.msra.mxu0 %v3018_v9 }
  0x70   :  { %2063 = vmatpush1.bf16.msra.mxu1 %v3022_v14  ;;  %2033 = vmatprep.subr.bf16.mxu0 %v3026_v18 }
  0x71   :  { %2065 = vmatprep.subr.bf16.mxu1 %v3029_v22 }
  0x73   :  { %2035 = vmatpush1.bf16.msra.mxu0 %v3035_v25 }
  0x74   :  { %2067 = vmatpush1.bf16.msra.mxu1 %v3039_v27  ;;  %2069 = vmatprep.subr.bf16.mxu0 %v2912_v38 }
  0x75   :  { %2101 = vmatprep.subr.bf16.mxu1 %v2914_v41 }
 0x129   :  { %v519_v39 = vpop.f32.mrb[0].mxu0 }
 0x12a   :  { %v2452_v43 = vadd.f32 %v519_v39, %v3089_v35  ;;  %v590_v45 = vpop.f32.mrb[0].mxu1  ;;  %v521_v46 = vpop.f32.mrb[1].mxu0 }
 0x12b   :  { %v2453_v49 = vadd.f32 %v521_v46, %v3091_v37  ;;  %v592_v51 = vpop.f32.mrb[1].mxu1  ;;  %v2468_v5 = vadd.f32 %v590_v45, %v3098_v1 }
 0x12c   :  { %v1852_v52 = vmul.f32 -1.442695, %v2452_v43  ;;  %v2469_v61 = vadd.f32 %v592_v51, %v3095_v57 }
 0x12d   :  { %v1853_v55 = vmul.f32 -1.442695, %v2453_v49 }
 0x12e   :  { %2520 = vpow2.f32 %v1852_v52  ;;  %v1854_v2 = vmul.f32 -1.442695, %v2469_v61 }
 0x12f   :  { %2522 = vpow2.f32 %v1853_v55 }
 0x130   :  { %2524 = vpow2.f32 %v1854_v2 }
 0x131   :  { %2526 = vtanh.f32 %v2468_v5 }
 0x138   :  { %v2521_v7 = vpop.eup %2520 }
 0x139   :  { %v2523_v8 = vpop.eup %2522  ;;  %v602_v11 = vadd.f32 1.0, %v2521_v7 }
 0x13a   :  { %v608_v12 = vadd.f32 1.0, %v2523_v8  ;;  %v2525_v15 = vpop.eup %2524 }
 0x13b   :  { %2528 = vrcp.f32 %v602_v11  ;;  %v2527_v17 = vpop.eup %2526  ;;  %v615_v28 = vadd.f32 1.0, %v2525_v15 }
 0x13c   :  { %2530 = vrcp.f32 %v608_v12 }
 0x13d   :  { %2532 = vrcp.f32 %v615_v28 }
 0x145   :  { %v2529_v20 = vpop.eup %2528 }
 0x146   :  { %v2531_v21 = vpop.eup %2530  ;;  %v619_v24 = vmul.f32 %v2529_v20, %v2527_v17 }
 0x147   :  { %v618_v30 = vmul.f32 0.0, %v2531_v21  ;;  %v2533_v33 = vpop.eup %2532 }
 0x149   :  { %v3101_v31 = vadd.f32 %v619_v24, %v618_v30 }
 0x14b   :  { %2534 = vtanh.f32 %v3101_v31 }
 0x155   :  { %v2535_v34 = vpop.eup %2534 }
 0x156   :  { %v622_v39 = vmul.f32 %v2535_v34, %v2533_v33 }
 0x158   :  { %692 = vmatmul.mubr.f32.vlgmr.msra.gmra.mrb[2].mxu0 %v622_v39  ;;  %763 = vmatmul.mubr.f32.vlgmr.msra.gmra.mrb[2].mxu1 %v622_v39 }
 0x159   :  { %2071 = vmatpush1.bf16.msra.mxu0 %v2919_v47  ;;  %2103 = vmatpush1.bf16.msra.mxu1 %v2922_v50 }
 0x15a   :  { %2073 = vmatprep.subr.bf16.mxu0 %v2925_v53  ;;  %2105 = vmatprep.subr.bf16.mxu1 %v2927_v56 }
 0x15b   :  { %865 = vmatprep.mubr.f32.mxu0 %v2675_v0  ;;  %936 = vmatprep.mubr.f32.mxu1 %v2675_v0 }
 0x15d   :  { %2075 = vmatpush1.bf16.msra.mxu0 %v2933_v60  ;;  %2107 = vmatpush1.bf16.msra.mxu1 %v2937_v63 }
 0x15e   :  { %2077 = vmatprep.subr.bf16.mxu0 %v2941_v3  ;;  %2109 = vmatprep.subr.bf16.mxu1 %v2944_v6 }
 0x161   :  { %2079 = vmatpush1.bf16.msra.mxu0 %v2950_v10  ;;  %2111 = vmatpush1.bf16.msra.mxu1 %v2954_v13 }
 0x162   :  { %2081 = vmatprep.subr.bf16.mxu0 %v2958_v16  ;;  %2113 = vmatprep.subr.bf16.mxu1 %v2961_v19 }
 0x165   :  { %2083 = vmatpush1.bf16.msra.mxu0 %v2967_v23  ;;  %2115 = vmatpush1.bf16.msra.mxu1 %v2971_v26 }
 0x166   :  { %2085 = vmatprep.subr.bf16.mxu0 %v2975_v29  ;;  %2117 = vmatprep.subr.bf16.mxu1 %v2978_v32 }
 0x169   :  { %2087 = vmatpush1.bf16.msra.mxu0 %v2984_v36  ;;  %2119 = vmatpush1.bf16.msra.mxu1 %v2988_v40 }
 0x16a   :  { %2089 = vmatprep.subr.bf16.mxu0 %v2992_v44  ;;  %2121 = vmatprep.subr.bf16.mxu1 %v2995_v48 }
 0x16d   :  { %2091 = vmatpush1.bf16.msra.mxu0 %v3001_v54  ;;  %2123 = vmatpush1.bf16.msra.mxu1 %v3005_v58 }
 0x16e   :  { %2093 = vmatprep.subr.bf16.mxu0 %v3009_v62  ;;  %2125 = vmatprep.subr.bf16.mxu1 %v3012_v4 }
 0x171   :  { %2095 = vmatpush1.bf16.msra.mxu0 %v3018_v9  ;;  %2127 = vmatpush1.bf16.msra.mxu1 %v3022_v14 }
 0x172   :  { %2097 = vmatprep.subr.bf16.mxu0 %v3026_v18  ;;  %2129 = vmatprep.subr.bf16.mxu1 %v3029_v22 }
 0x175   :  { %2099 = vmatpush1.bf16.msra.mxu0 %v3035_v25  ;;  %2131 = vmatpush1.bf16.msra.mxu1 %v3039_v27 }
 0x176   :  { %2133 = vmatprep.subr.bf16.mxu0 %v2912_v38  ;;  %2165 = vmatprep.subr.bf16.mxu1 %v2914_v41 }
 0x22b   :  { %v693_v42 = vpop.f32.mrb[2].mxu0  ;;  %v764_v43 = vpop.f32.mrb[2].mxu1 }
 0x22c   :  { %v2454_v45 = vadd.f32 %v693_v42, %v3089_v35  ;;  %v695_v46 = vpop.f32.mrb[3].mxu0  ;;  %v766_v49 = vpop.f32.mrb[3].mxu1  ;;  %v2470_v2 = vadd.f32 %v764_v43, %v3098_v1 }
 0x22d   :  { %v2455_v51 = vadd.f32 %v695_v46, %v3091_v37  ;;  %v2471_v59 = vadd.f32 %v766_v49, %v3095_v57 }
 0x22e   :  { %v1855_v52 = vmul.f32 -1.442695, %v2454_v45 }
 0x22f   :  { %v1856_v55 = vmul.f32 -1.442695, %v2455_v51  ;;  %v1857_v61 = vmul.f32 -1.442695, %v2471_v59 }
 0x230   :  { %2536 = vpow2.f32 %v1855_v52 }
 0x231   :  { %2538 = vpow2.f32 %v1856_v55 }
 0x232   :  { %2540 = vpow2.f32 %v1857_v61 }
 0x233   :  { %2542 = vtanh.f32 %v2470_v2 }
 0x23a   :  { %v2537_v5 = vpop.eup %2536 }
 0x23b   :  { %v2539_v7 = vpop.eup %2538  ;;  %v776_v8 = vadd.f32 1.0, %v2537_v5 }
 0x23c   :  { %v782_v11 = vadd.f32 1.0, %v2539_v7  ;;  %v2541_v12 = vpop.eup %2540 }
 0x23d   :  { %2544 = vrcp.f32 %v776_v8  ;;  %v2543_v15 = vpop.eup %2542  ;;  %v789_v24 = vadd.f32 1.0, %v2541_v12 }
 0x23e   :  { %2546 = vrcp.f32 %v782_v11 }
 0x23f   :  { %2548 = vrcp.f32 %v789_v24 }
 0x247   :  { %v2545_v17 = vpop.eup %2544 }
 0x248   :  { %v2547_v20 = vpop.eup %2546  ;;  %v793_v21 = vmul.f32 %v2545_v17, %v2543_v15 }
 0x249   :  { %v792_v28 = vmul.f32 %v2547_v20, %v3101_v31  ;;  %v2549_v33 = vpop.eup %2548 }
 0x24b   :  { %v3143_v30 = vadd.f32 %v793_v21, %v792_v28 }
 0x24d   :  { %2550 = vtanh.f32 %v3143_v30 }
 0x257   :  { %v2551_v34 = vpop.eup %2550 }
 0x258   :  { %v796_v39 = vmul.f32 %v2551_v34, %v2549_v33 }
 0x25a   :  { %866 = vmatmul.mubr.f32.vlgmr.msra.gmra.mrb[4].mxu0 %v796_v39  ;;  %937 = vmatmul.mubr.f32.vlgmr.msra.gmra.mrb[4].mxu1 %v796_v39 }
 0x25b   :  { %2135 = vmatpush1.bf16.msra.mxu0 %v2919_v47  ;;  %2167 = vmatpush1.bf16.msra.mxu1 %v2922_v50 }
 0x25c   :  { %2137 = vmatprep.subr.bf16.mxu0 %v2925_v53  ;;  %2169 = vmatprep.subr.bf16.mxu1 %v2927_v56 }
 0x25d   :  { %1039 = vmatprep.mubr.f32.mxu0 %v2675_v0  ;;  %1110 = vmatprep.mubr.f32.mxu1 %v2675_v0 }
 0x25f   :  { %2139 = vmatpush1.bf16.msra.mxu0 %v2933_v60  ;;  %2171 = vmatpush1.bf16.msra.mxu1 %v2937_v63 }
 0x260   :  { %2141 = vmatprep.subr.bf16.mxu0 %v2941_v3  ;;  %2173 = vmatprep.subr.bf16.mxu1 %v2944_v6 }
 0x263   :  { %2143 = vmatpush1.bf16.msra.mxu0 %v2950_v10  ;;  %2175 = vmatpush1.bf16.msra.mxu1 %v2954_v13 }
 0x264   :  { %2145 = vmatprep.subr.bf16.mxu0 %v2958_v16  ;;  %2177 = vmatprep.subr.bf16.mxu1 %v2961_v19 }
 0x267   :  { %2147 = vmatpush1.bf16.msra.mxu0 %v2967_v23  ;;  %2179 = vmatpush1.bf16.msra.mxu1 %v2971_v26 }
 0x268   :  { %2149 = vmatprep.subr.bf16.mxu0 %v2975_v29  ;;  %2181 = vmatprep.subr.bf16.mxu1 %v2978_v32 }
 0x26b   :  { %2151 = vmatpush1.bf16.msra.mxu0 %v2984_v36  ;;  %2183 = vmatpush1.bf16.msra.mxu1 %v2988_v40 }
 0x26c   :  { %2153 = vmatprep.subr.bf16.mxu0 %v2992_v44  ;;  %2185 = vmatprep.subr.bf16.mxu1 %v2995_v48 }
 0x26f   :  { %2155 = vmatpush1.bf16.msra.mxu0 %v3001_v54  ;;  %2187 = vmatpush1.bf16.msra.mxu1 %v3005_v58 }
 0x270   :  { %2157 = vmatprep.subr.bf16.mxu0 %v3009_v62  ;;  %2189 = vmatprep.subr.bf16.mxu1 %v3012_v4 }
 0x273   :  { %2159 = vmatpush1.bf16.msra.mxu0 %v3018_v9  ;;  %2191 = vmatpush1.bf16.msra.mxu1 %v3022_v14 }
 0x274   :  { %2161 = vmatprep.subr.bf16.mxu0 %v3026_v18  ;;  %2193 = vmatprep.subr.bf16.mxu1 %v3029_v22 }
 0x277   :  { %2163 = vmatpush1.bf16.msra.mxu0 %v3035_v25  ;;  %2195 = vmatpush1.bf16.msra.mxu1 %v3039_v27 }
 0x278   :  { %2197 = vmatprep.subr.bf16.mxu0 %v2912_v38  ;;  %2229 = vmatprep.subr.bf16.mxu1 %v2914_v41 }
 0x32d   :  { %v867_v31 = vpop.f32.mrb[4].mxu0  ;;  %v938_v42 = vpop.f32.mrb[4].mxu1 }
 0x32e   :  { %v2456_v43 = vadd.f32 %v867_v31, %v3089_v35  ;;  %v869_v45 = vpop.f32.mrb[5].mxu0  ;;  %v940_v46 = vpop.f32.mrb[5].mxu1  ;;  %v2472_v61 = vadd.f32 %v938_v42, %v3098_v1 }
 0x32f   :  { %v2457_v49 = vadd.f32 %v869_v45, %v3091_v37  ;;  %v2473_v55 = vadd.f32 %v940_v46, %v3095_v57 }
 0x330   :  { %v1858_v51 = vmul.f32 -1.442695, %v2456_v43 }
 0x331   :  { %v1859_v52 = vmul.f32 -1.442695, %v2457_v49  ;;  %v1860_v59 = vmul.f32 -1.442695, %v2473_v55 }
 0x332   :  { %2552 = vpow2.f32 %v1858_v51 }
 0x333   :  { %2554 = vpow2.f32 %v1859_v52 }
 0x334   :  { %2556 = vpow2.f32 %v1860_v59 }
 0x335   :  { %2558 = vtanh.f32 %v2472_v61 }
 0x33c   :  { %v2553_v2 = vpop.eup %2552 }
 0x33d   :  { %v2555_v5 = vpop.eup %2554  ;;  %v950_v7 = vadd.f32 1.0, %v2553_v2 }
 0x33e   :  { %v956_v8 = vadd.f32 1.0, %v2555_v5  ;;  %v2557_v11 = vpop.eup %2556 }
 0x33f   :  { %2560 = vrcp.f32 %v950_v7  ;;  %v2559_v12 = vpop.eup %2558  ;;  %v963_v21 = vadd.f32 1.0, %v2557_v11 }
 0x340   :  { %2562 = vrcp.f32 %v956_v8 }
 0x341   :  { %2564 = vrcp.f32 %v963_v21 }
 0x349   :  { %v2561_v15 = vpop.eup %2560 }
 0x34a   :  { %v2563_v17 = vpop.eup %2562  ;;  %v967_v20 = vmul.f32 %v2561_v15, %v2559_v12 }
 0x34b   :  { %v966_v24 = vmul.f32 %v2563_v17, %v3143_v30  ;;  %v2565_v33 = vpop.eup %2564 }
 0x34d   :  { %v3185_v28 = vadd.f32 %v967_v20, %v966_v24 }
 0x34f   :  { %2566 = vtanh.f32 %v3185_v28 }
 0x359   :  { %v2567_v34 = vpop.eup %2566 }
 0x35a   :  { %v970_v39 = vmul.f32 %v2567_v34, %v2565_v33 }
 0x35c   :  { %1040 = vmatmul.mubr.f32.vlgmr.msra.gmra.mrb[6].mxu0 %v970_v39  ;;  %1111 = vmatmul.mubr.f32.vlgmr.msra.gmra.mrb[6].mxu1 %v970_v39 }
 0x35d   :  { %2199 = vmatpush1.bf16.msra.mxu0 %v2919_v47  ;;  %2231 = vmatpush1.bf16.msra.mxu1 %v2922_v50 }
 0x35e   :  { %2201 = vmatprep.subr.bf16.mxu0 %v2925_v53  ;;  %2233 = vmatprep.subr.bf16.mxu1 %v2927_v56 }
 0x35f   :  { %1213 = vmatprep.mubr.f32.mxu0 %v2675_v0  ;;  %1284 = vmatprep.mubr.f32.mxu1 %v2675_v0 }
 0x361   :  { %2203 = vmatpush1.bf16.msra.mxu0 %v2933_v60  ;;  %2235 = vmatpush1.bf16.msra.mxu1 %v2937_v63 }
 0x362   :  { %2205 = vmatprep.subr.bf16.mxu0 %v2941_v3  ;;  %2237 = vmatprep.subr.bf16.mxu1 %v2944_v6 }
 0x365   :  { %2207 = vmatpush1.bf16.msra.mxu0 %v2950_v10  ;;  %2239 = vmatpush1.bf16.msra.mxu1 %v2954_v13 }
 0x366   :  { %2209 = vmatprep.subr.bf16.mxu0 %v2958_v16  ;;  %2241 = vmatprep.subr.bf16.mxu1 %v2961_v19 }
 0x369   :  { %2211 = vmatpush1.bf16.msra.mxu0 %v2967_v23  ;;  %2243 = vmatpush1.bf16.msra.mxu1 %v2971_v26 }
 0x36a   :  { %2213 = vmatprep.subr.bf16.mxu0 %v2975_v29  ;;  %2245 = vmatprep.subr.bf16.mxu1 %v2978_v32 }
 0x36d   :  { %2215 = vmatpush1.bf16.msra.mxu0 %v2984_v36  ;;  %2247 = vmatpush1.bf16.msra.mxu1 %v2988_v40 }
 0x36e   :  { %2217 = vmatprep.subr.bf16.mxu0 %v2992_v44  ;;  %2249 = vmatprep.subr.bf16.mxu1 %v2995_v48 }
 0x371   :  { %2219 = vmatpush1.bf16.msra.mxu0 %v3001_v54  ;;  %2251 = vmatpush1.bf16.msra.mxu1 %v3005_v58 }
 0x372   :  { %2221 = vmatprep.subr.bf16.mxu0 %v3009_v62  ;;  %2253 = vmatprep.subr.bf16.mxu1 %v3012_v4 }
 0x375   :  { %2223 = vmatpush1.bf16.msra.mxu0 %v3018_v9  ;;  %2255 = vmatpush1.bf16.msra.mxu1 %v3022_v14 }
 0x376   :  { %2225 = vmatprep.subr.bf16.mxu0 %v3026_v18  ;;  %2257 = vmatprep.subr.bf16.mxu1 %v3029_v22 }
 0x379   :  { %2227 = vmatpush1.bf16.msra.mxu0 %v3035_v25  ;;  %2259 = vmatpush1.bf16.msra.mxu1 %v3039_v27 }
 0x37a   :  { %2261 = vmatprep.subr.bf16.mxu0 %v2912_v38  ;;  %2293 = vmatprep.subr.bf16.mxu1 %v2914_v41 }
 0x42f   :  { %v1041_v30 = vpop.f32.mrb[6].mxu0  ;;  %v1112_v31 = vpop.f32.mrb[6].mxu1 }
 0x430   :  { %v2458_v42 = vadd.f32 %v1041_v30, %v3089_v35  ;;  %v1043_v43 = vpop.f32.mrb[7].mxu0  ;;  %v1114_v45 = vpop.f32.mrb[7].mxu1  ;;  %v2474_v59 = vadd.f32 %v1112_v31, %v3098_v1 }
 0x431   :  { %v2459_v46 = vadd.f32 %v1043_v43, %v3091_v37  ;;  %v2475_v52 = vadd.f32 %v1114_v45, %v3095_v57 }
 0x432   :  { %v1861_v49 = vmul.f32 -1.442695, %v2458_v42 }
 0x433   :  { %v1862_v51 = vmul.f32 -1.442695, %v2459_v46  ;;  %v1863_v55 = vmul.f32 -1.442695, %v2475_v52 }
 0x434   :  { %2568 = vpow2.f32 %v1861_v49 }
 0x435   :  { %2570 = vpow2.f32 %v1862_v51 }
 0x436   :  { %2572 = vpow2.f32 %v1863_v55 }
 0x437   :  { %2574 = vtanh.f32 %v2474_v59 }
 0x43e   :  { %v2569_v61 = vpop.eup %2568 }
 0x43f   :  { %v2571_v2 = vpop.eup %2570  ;;  %v1124_v5 = vadd.f32 1.0, %v2569_v61 }
 0x440   :  { %v1130_v7 = vadd.f32 1.0, %v2571_v2  ;;  %v2573_v8 = vpop.eup %2572 }
 0x441   :  { %2576 = vrcp.f32 %v1124_v5  ;;  %v2575_v11 = vpop.eup %2574  ;;  %v1137_v20 = vadd.f32 1.0, %v2573_v8 }
 0x442   :  { %2578 = vrcp.f32 %v1130_v7 }
 0x443   :  { %2580 = vrcp.f32 %v1137_v20 }
 0x44b   :  { %v2577_v12 = vpop.eup %2576 }
 0x44c   :  { %v2579_v15 = vpop.eup %2578  ;;  %v1141_v17 = vmul.f32 %v2577_v12, %v2575_v11 }
 0x44d   :  { %v1140_v21 = vmul.f32 %v2579_v15, %v3185_v28  ;;  %v2581_v33 = vpop.eup %2580 }
 0x44f   :  { %v3227_v24 = vadd.f32 %v1141_v17, %v1140_v21 }
 0x451   :  { %2582 = vtanh.f32 %v3227_v24 }
 0x45b   :  { %v2583_v34 = vpop.eup %2582 }
 0x45c   :  { %v1144_v39 = vmul.f32 %v2583_v34, %v2581_v33 }
 0x45e   :  { %1214 = vmatmul.mubr.f32.vlgmr.msra.gmra.mrb[8].mxu0 %v1144_v39  ;;  %1285 = vmatmul.mubr.f32.vlgmr.msra.gmra.mrb[8].mxu1 %v1144_v39 }
 0x45f   :  { %2263 = vmatpush1.bf16.msra.mxu0 %v2919_v47  ;;  %2295 = vmatpush1.bf16.msra.mxu1 %v2922_v50 }
 0x460   :  { %2265 = vmatprep.subr.bf16.mxu0 %v2925_v53  ;;  %2297 = vmatprep.subr.bf16.mxu1 %v2927_v56 }
 0x461   :  { %1387 = vmatprep.mubr.f32.mxu0 %v2675_v0  ;;  %1458 = vmatprep.mubr.f32.mxu1 %v2675_v0 }
 0x463   :  { %2267 = vmatpush1.bf16.msra.mxu0 %v2933_v60  ;;  %2299 = vmatpush1.bf16.msra.mxu1 %v2937_v63 }
 0x464   :  { %2269 = vmatprep.subr.bf16.mxu0 %v2941_v3  ;;  %2301 = vmatprep.subr.bf16.mxu1 %v2944_v6 }
 0x467   :  { %2271 = vmatpush1.bf16.msra.mxu0 %v2950_v10  ;;  %2303 = vmatpush1.bf16.msra.mxu1 %v2954_v13 }
 0x468   :  { %2273 = vmatprep.subr.bf16.mxu0 %v2958_v16  ;;  %2305 = vmatprep.subr.bf16.mxu1 %v2961_v19 }
 0x46b   :  { %2275 = vmatpush1.bf16.msra.mxu0 %v2967_v23  ;;  %2307 = vmatpush1.bf16.msra.mxu1 %v2971_v26 }
 0x46c   :  { %2277 = vmatprep.subr.bf16.mxu0 %v2975_v29  ;;  %2309 = vmatprep.subr.bf16.mxu1 %v2978_v32 }
 0x46f   :  { %2279 = vmatpush1.bf16.msra.mxu0 %v2984_v36  ;;  %2311 = vmatpush1.bf16.msra.mxu1 %v2988_v40 }
 0x470   :  { %2281 = vmatprep.subr.bf16.mxu0 %v2992_v44  ;;  %2313 = vmatprep.subr.bf16.mxu1 %v2995_v48 }
 0x473   :  { %2283 = vmatpush1.bf16.msra.mxu0 %v3001_v54  ;;  %2315 = vmatpush1.bf16.msra.mxu1 %v3005_v58 }
 0x474   :  { %2285 = vmatprep.subr.bf16.mxu0 %v3009_v62  ;;  %2317 = vmatprep.subr.bf16.mxu1 %v3012_v4 }
 0x477   :  { %2287 = vmatpush1.bf16.msra.mxu0 %v3018_v9  ;;  %2319 = vmatpush1.bf16.msra.mxu1 %v3022_v14 }
 0x478   :  { %2289 = vmatprep.subr.bf16.mxu0 %v3026_v18  ;;  %2321 = vmatprep.subr.bf16.mxu1 %v3029_v22 }
 0x47b   :  { %2291 = vmatpush1.bf16.msra.mxu0 %v3035_v25  ;;  %2323 = vmatpush1.bf16.msra.mxu1 %v3039_v27 }
 0x47c   :  { %2325 = vmatprep.subr.bf16.mxu0 %v2912_v38  ;;  %2357 = vmatprep.subr.bf16.mxu1 %v2914_v41 }
 0x531   :  { %v1215_v28 = vpop.f32.mrb[8].mxu0  ;;  %v1286_v30 = vpop.f32.mrb[8].mxu1 }
 0x532   :  { %v2460_v31 = vadd.f32 %v1215_v28, %v3089_v35  ;;  %v1217_v42 = vpop.f32.mrb[9].mxu0  ;;  %v1288_v43 = vpop.f32.mrb[9].mxu1  ;;  %v2476_v55 = vadd.f32 %v1286_v30, %v3098_v1 }
 0x533   :  { %v2461_v45 = vadd.f32 %v1217_v42, %v3091_v37  ;;  %v2477_v51 = vadd.f32 %v1288_v43, %v3095_v57 }
 0x534   :  { %v1864_v46 = vmul.f32 -1.442695, %v2460_v31 }
 0x535   :  { %v1865_v49 = vmul.f32 -1.442695, %v2461_v45  ;;  %v1866_v52 = vmul.f32 -1.442695, %v2477_v51 }
 0x536   :  { %2584 = vpow2.f32 %v1864_v46 }
 0x537   :  { %2586 = vpow2.f32 %v1865_v49 }
 0x538   :  { %2588 = vpow2.f32 %v1866_v52 }
 0x539   :  { %2590 = vtanh.f32 %v2476_v55 }
 0x540   :  { %v2585_v59 = vpop.eup %2584 }
 0x541   :  { %v2587_v61 = vpop.eup %2586  ;;  %v1298_v2 = vadd.f32 1.0, %v2585_v59 }
 0x542   :  { %v1304_v5 = vadd.f32 1.0, %v2587_v61  ;;  %v2589_v7 = vpop.eup %2588 }
 0x543   :  { %2592 = vrcp.f32 %v1298_v2  ;;  %v2591_v8 = vpop.eup %2590  ;;  %v1311_v17 = vadd.f32 1.0, %v2589_v7 }
 0x544   :  { %2594 = vrcp.f32 %v1304_v5 }
 0x545   :  { %2596 = vrcp.f32 %v1311_v17 }
 0x54d   :  { %v2593_v11 = vpop.eup %2592 }
 0x54e   :  { %v2595_v12 = vpop.eup %2594  ;;  %v1315_v15 = vmul.f32 %v2593_v11, %v2591_v8 }
 0x54f   :  { %v1314_v20 = vmul.f32 %v2595_v12, %v3227_v24  ;;  %v2597_v33 = vpop.eup %2596 }
 0x551   :  { %v3269_v21 = vadd.f32 %v1315_v15, %v1314_v20 }
 0x553   :  { %2598 = vtanh.f32 %v3269_v21 }
 0x55d   :  { %v2599_v34 = vpop.eup %2598 }
 0x55e   :  { %v1318_v39 = vmul.f32 %v2599_v34, %v2597_v33 }
 0x560   :  { %1388 = vmatmul.mubr.f32.vlgmr.msra.gmra.mrb[10].mxu0 %v1318_v39  ;;  %1459 = vmatmul.mubr.f32.vlgmr.msra.gmra.mrb[10].mxu1 %v1318_v39 }
 0x561   :  { %2327 = vmatpush1.bf16.msra.mxu0 %v2919_v47  ;;  %2359 = vmatpush1.bf16.msra.mxu1 %v2922_v50 }
 0x562   :  { %2329 = vmatprep.subr.bf16.mxu0 %v2925_v53  ;;  %2361 = vmatprep.subr.bf16.mxu1 %v2927_v56 }
 0x563   :  { %1561 = vmatprep.mubr.f32.mxu0 %v2675_v0  ;;  %1632 = vmatprep.mubr.f32.mxu1 %v2675_v0 }
 0x565   :  { %2331 = vmatpush1.bf16.msra.mxu0 %v2933_v60  ;;  %2363 = vmatpush1.bf16.msra.mxu1 %v2937_v63 }
 0x566   :  { %2333 = vmatprep.subr.bf16.mxu0 %v2941_v3  ;;  %2365 = vmatprep.subr.bf16.mxu1 %v2944_v6 }
 0x569   :  { %2335 = vmatpush1.bf16.msra.mxu0 %v2950_v10  ;;  %2367 = vmatpush1.bf16.msra.mxu1 %v2954_v13 }
 0x56a   :  { %2337 = vmatprep.subr.bf16.mxu0 %v2958_v16  ;;  %2369 = vmatprep.subr.bf16.mxu1 %v2961_v19 }
 0x56d   :  { %2339 = vmatpush1.bf16.msra.mxu0 %v2967_v23  ;;  %2371 = vmatpush1.bf16.msra.mxu1 %v2971_v26 }
 0x56e   :  { %2341 = vmatprep.subr.bf16.mxu0 %v2975_v29  ;;  %2373 = vmatprep.subr.bf16.mxu1 %v2978_v32 }
 0x571   :  { %2343 = vmatpush1.bf16.msra.mxu0 %v2984_v36  ;;  %2375 = vmatpush1.bf16.msra.mxu1 %v2988_v40 }
 0x572   :  { %2345 = vmatprep.subr.bf16.mxu0 %v2992_v44  ;;  %2377 = vmatprep.subr.bf16.mxu1 %v2995_v48 }
 0x575   :  { %2347 = vmatpush1.bf16.msra.mxu0 %v3001_v54  ;;  %2379 = vmatpush1.bf16.msra.mxu1 %v3005_v58 }
 0x576   :  { %2349 = vmatprep.subr.bf16.mxu0 %v3009_v62  ;;  %2381 = vmatprep.subr.bf16.mxu1 %v3012_v4 }
 0x579   :  { %2351 = vmatpush1.bf16.msra.mxu0 %v3018_v9  ;;  %2383 = vmatpush1.bf16.msra.mxu1 %v3022_v14 }
 0x57a   :  { %2353 = vmatprep.subr.bf16.mxu0 %v3026_v18  ;;  %2385 = vmatprep.subr.bf16.mxu1 %v3029_v22 }
 0x57d   :  { %2355 = vmatpush1.bf16.msra.mxu0 %v3035_v25  ;;  %2387 = vmatpush1.bf16.msra.mxu1 %v3039_v27 }
 0x57e   :  { %2389 = vmatprep.subr.bf16.mxu0 %v2912_v38  ;;  %2421 = vmatprep.subr.bf16.mxu1 %v2914_v41 }
 0x633   :  { %v1389_v24 = vpop.f32.mrb[10].mxu0  ;;  %v1460_v28 = vpop.f32.mrb[10].mxu1 }
 0x634   :  { %v2462_v30 = vadd.f32 %v1389_v24, %v3089_v35  ;;  %v1391_v31 = vpop.f32.mrb[11].mxu0  ;;  %v1462_v42 = vpop.f32.mrb[11].mxu1  ;;  %v2478_v52 = vadd.f32 %v1460_v28, %v3098_v1 }
 0x635   :  { %v2463_v43 = vadd.f32 %v1391_v31, %v3091_v37  ;;  %v2479_v49 = vadd.f32 %v1462_v42, %v3095_v57 }
 0x636   :  { %v1867_v45 = vmul.f32 -1.442695, %v2462_v30 }
 0x637   :  { %v1868_v46 = vmul.f32 -1.442695, %v2463_v43  ;;  %v1869_v51 = vmul.f32 -1.442695, %v2479_v49 }
 0x638   :  { %2600 = vpow2.f32 %v1867_v45 }
 0x639   :  { %2602 = vpow2.f32 %v1868_v46 }
 0x63a   :  { %2604 = vpow2.f32 %v1869_v51 }
 0x63b   :  { %2606 = vtanh.f32 %v2478_v52 }
 0x642   :  { %v2601_v38 = vpop.eup %2600 }
 0x643   :  { %v2603_v55 = vpop.eup %2602  ;;  %v1472_v41 = vadd.f32 1.0, %v2601_v38 }
 0x644   :  { %v1478_v59 = vadd.f32 1.0, %v2603_v55  ;;  %v2605_v61 = vpop.eup %2604 }
 0x645   :  { %2608 = vrcp.f32 %v1472_v41  ;;  %v2607_v2 = vpop.eup %2606  ;;  %v1485_v11 = vadd.f32 1.0, %v2605_v61 }
 0x646   :  { %2610 = vrcp.f32 %v1478_v59 }
 0x647   :  { %2612 = vrcp.f32 %v1485_v11 }
 0x64f   :  { %v2609_v5 = vpop.eup %2608 }
 0x650   :  { %v2611_v7 = vpop.eup %2610  ;;  %v1489_v8 = vmul.f32 %v2609_v5, %v2607_v2 }
 0x651   :  { %v1488_v12 = vmul.f32 %v2611_v7, %v3269_v21  ;;  %v2613_v17 = vpop.eup %2612 }
 0x653   :  { %v3311_v15 = vadd.f32 %v1489_v8, %v1488_v12 }
 0x655   :  { %2614 = vtanh.f32 %v3311_v15 }
 0x65f   :  { %v2615_v20 = vpop.eup %2614 }
 0x660   :  { %v1492_v33 = vmul.f32 %v2615_v20, %v2613_v17 }
 0x662   :  { %1562 = vmatmul.mubr.f32.vlgmr.msra.gmra.mrb[12].mxu0 %v1492_v33  ;;  %1633 = vmatmul.mubr.f32.vlgmr.msra.gmra.mrb[12].mxu1 %v1492_v33 }
 0x663   :  { %2391 = vmatpush1.bf16.msra.mxu0 %v2919_v47  ;;  %2423 = vmatpush1.bf16.msra.mxu1 %v2922_v50 }
 0x664   :  { %2393 = vmatprep.subr.bf16.mxu0 %v2925_v53  ;;  %2425 = vmatprep.subr.bf16.mxu1 %v2927_v56 }
 0x665   :  { %1735 = vmatprep.mubr.f32.mxu0 %v2675_v0  ;;  %1806 = vmatprep.mubr.f32.mxu1 %v2675_v0 }
 0x667   :  { %2395 = vmatpush1.bf16.msra.mxu0 %v2933_v60  ;;  %2427 = vmatpush1.bf16.msra.mxu1 %v2937_v63 }
 0x668   :  { %2397 = vmatprep.subr.bf16.mxu0 %v2941_v3  ;;  %2429 = vmatprep.subr.bf16.mxu1 %v2944_v6 }
 0x66b   :  { %2399 = vmatpush1.bf16.msra.mxu0 %v2950_v10  ;;  %2431 = vmatpush1.bf16.msra.mxu1 %v2954_v13 }
 0x66c   :  { %2401 = vmatprep.subr.bf16.mxu0 %v2958_v16  ;;  %2433 = vmatprep.subr.bf16.mxu1 %v2961_v19 }
 0x66f   :  { %2403 = vmatpush1.bf16.msra.mxu0 %v2967_v23  ;;  %2435 = vmatpush1.bf16.msra.mxu1 %v2971_v26 }
 0x670   :  { %2405 = vmatprep.subr.bf16.mxu0 %v2975_v29  ;;  %2437 = vmatprep.subr.bf16.mxu1 %v2978_v32 }
 0x673   :  { %2407 = vmatpush1.bf16.msra.mxu0 %v2984_v36  ;;  %2439 = vmatpush1.bf16.msra.mxu1 %v2988_v40 }
 0x674   :  { %2409 = vmatprep.subr.bf16.mxu0 %v2992_v44  ;;  %2441 = vmatprep.subr.bf16.mxu1 %v2995_v48 }
 0x677   :  { %2411 = vmatpush1.bf16.msra.mxu0 %v3001_v54  ;;  %2443 = vmatpush1.bf16.msra.mxu1 %v3005_v58 }
 0x678   :  { %2413 = vmatprep.subr.bf16.mxu0 %v3009_v62  ;;  %2445 = vmatprep.subr.bf16.mxu1 %v3012_v4 }
 0x67b   :  { %2415 = vmatpush1.bf16.msra.mxu0 %v3018_v9  ;;  %2447 = vmatpush1.bf16.msra.mxu1 %v3022_v14 }
 0x67c   :  { %2417 = vmatprep.subr.bf16.mxu0 %v3026_v18  ;;  %2449 = vmatprep.subr.bf16.mxu1 %v3029_v22 }
 0x67f   :  { %2419 = vmatpush1.bf16.msra.mxu0 %v3035_v25  ;;  %2451 = vmatpush1.bf16.msra.mxu1 %v3039_v27 }
 0x735   :  { %v1563_v0 = vpop.f32.mrb[12].mxu0  ;;  %v1634_v47 = vpop.f32.mrb[12].mxu1 }
 0x736   :  { %v2464_v50 = vadd.f32 %v1563_v0, %v3089_v35  ;;  %v1565_v53 = vpop.f32.mrb[13].mxu0  ;;  %v1636_v56 = vpop.f32.mrb[13].mxu1  ;;  %v2480_v13 = vadd.f32 %v1634_v47, %v3098_v1 }
 0x737   :  { %v2465_v60 = vadd.f32 %v1565_v53, %v3091_v37  ;;  %v2481_v6 = vadd.f32 %v1636_v56, %v3095_v57 }
 0x738   :  { %v1870_v63 = vmul.f32 -1.442695, %v2464_v50 }
 0x739   :  { %v1871_v3 = vmul.f32 -1.442695, %v2465_v60  ;;  %v1872_v10 = vmul.f32 -1.442695, %v2481_v6 }
 0x73a   :  { %2616 = vpow2.f32 %v1870_v63 }
 0x73b   :  { %2618 = vpow2.f32 %v1871_v3 }
 0x73c   :  { %2620 = vpow2.f32 %v1872_v10 }
 0x73d   :  { %2622 = vtanh.f32 %v2480_v13 }
 0x744   :  { %v2617_v16 = vpop.eup %2616 }
 0x745   :  { %v2619_v19 = vpop.eup %2618  ;;  %v1646_v23 = vadd.f32 1.0, %v2617_v16 }
 0x746   :  { %v1652_v26 = vadd.f32 1.0, %v2619_v19  ;;  %v2621_v29 = vpop.eup %2620 }
 0x747   :  { %2624 = vrcp.f32 %v1646_v23  ;;  %v2623_v32 = vpop.eup %2622  ;;  %v1659_v48 = vadd.f32 1.0, %v2621_v29 }
 0x748   :  { %2626 = vrcp.f32 %v1652_v26 }
 0x749   :  { %2628 = vrcp.f32 %v1659_v48 }
 0x751   :  { %v2625_v36 = vpop.eup %2624 }
 0x752   :  { %v2627_v40 = vpop.eup %2626  ;;  %v1663_v44 = vmul.f32 %v2625_v36, %v2623_v32 }
 0x753   :  { %v1662_v54 = vmul.f32 %v2627_v40, %v3311_v15  ;;  %v2629_v62 = vpop.eup %2628 }
 0x755   :  { %v1664_v58 = vadd.f32 %v1663_v44, %v1662_v54 }
 0x757   :  { %2630 = vtanh.f32 %v1664_v58 }
 0x761   :  { %v2631_v4 = vpop.eup %2630 }
 0x762   :  { %v1666_v9 = vmul.f32 %v2631_v4, %v2629_v62 }
 0x764   :  { %1736 = vmatmul.mubr.f32.vlgmr.msra.gmra.mrb[14].mxu0 %v1666_v9  ;;  %1807 = vmatmul.mubr.f32.vlgmr.msra.gmra.mrb[14].mxu1 %v1666_v9 }
 0x837   :  { %v1737_v14 = vpop.f32.mrb[14].mxu0  ;;  %v1808_v18 = vpop.f32.mrb[14].mxu1 }
 0x838   :  { %v2466_v22 = vadd.f32 %v1737_v14, %v3089_v35  ;;  %v1739_v25 = vpop.f32.mrb[15].mxu0  ;;  %v1810_v27 = vpop.f32.mrb[15].mxu1  ;;  %v2482_v30 = vadd.f32 %v1808_v18, %v3098_v1 }
 0x839   :  { %v2467_v21 = vadd.f32 %v1739_v25, %v3091_v37  ;;  %v2483_v24 = vadd.f32 %v1810_v27, %v3095_v57 }
 0x83a   :  { %v1873_v34 = vmul.f32 -1.442695, %v2466_v22 }
 0x83b   :  { %v1874_v39 = vmul.f32 -1.442695, %v2467_v21  ;;  %v1875_v28 = vmul.f32 -1.442695, %v2483_v24 }
 0x83c   :  { %2632 = vpow2.f32 %v1873_v34 }
 0x83d   :  { %2634 = vpow2.f32 %v1874_v39 }
 0x83e   :  { %2636 = vpow2.f32 %v1875_v28 }
 0x83f   :  { %2638 = vtanh.f32 %v2482_v30 }
 0x846   :  { %v2633_v31 = vpop.eup %2632 }
 0x847   :  { %v2635_v42 = vpop.eup %2634  ;;  %v1820_v43 = vadd.f32 1.0, %v2633_v31 }
 0x848   :  { %v1826_v45 = vadd.f32 1.0, %v2635_v42  ;;  %v2637_v35 = vpop.eup %2636 }
 0x849   :  { %2640 = vrcp.f32 %v1820_v43  ;;  %v2639_v46 = vpop.eup %2638  ;;  %v1833_v52 = vadd.f32 1.0, %v2637_v35 }
 0x84a   :  { %2642 = vrcp.f32 %v1826_v45 }
 0x84b   :  { %2644 = vrcp.f32 %v1833_v52 }
 0x853   :  { %v2641_v37 = vpop.eup %2640 }
 0x854   :  { %v2643_v49 = vpop.eup %2642  ;;  %v1837_v51 = vmul.f32 %v2641_v37, %v2639_v46 }
 0x855   :  { %v1836_v38 = vmul.f32 %v2643_v49, %v1664_v58  ;;  %v2645_v57 = vpop.eup %2644 }
 0x857   :  { %v1838_v55 = vadd.f32 %v1837_v51, %v1836_v38 }
 0x859   :  { %2646 = vtanh.f32 %v1838_v55  ;;  %1842 = vst [vmem:[%s3366_s5] sm:$0xff] %v1838_v55 }
 0x863   :  { %v2647_v1 = vpop.eup %2646 }
 0x864   :  { %v1840_v41 = vmul.f32 %v2647_v1, %v2645_v57 }
 0x866   :  { %1841 = vst [vmem:[%s3365_s4] sm:$0xff] %v1840_v41 }
 0x867   :  { %1851 = vsyncpa [#allocation4], 1 }

</bundles_post_ra>
